<compile_context>
chip_gen: v7x
topology: tpu7x:2x2x1
jax: 0.10.0
libtpu: 0.0.40
codegen_flags: <defaults>
</compile_context>

<pallas_src>
import jax
import jax.numpy as jnp
from jax.experimental import pallas as pl
from jax.experimental.pallas import tpu as pltpu

FEATURE_DIM = 50
HIDDEN_DIM = 1024
LN_EPS = 1e-5
CLAMP_EPS = 1e-6
NOISE_CLIP = 0.3


# ---------------------------------------------------------------------------
# kernels
# ---------------------------------------------------------------------------
def _forward_mu(state_ref, wt_ref, bt_ref, lng_ref, lnb_ref,
                w1_ref, b1_ref, w2_ref, w2s_ref, b2_ref, w3_ref, b3_ref):
    """trunk Linear->LayerNorm->Tanh, then policy MLP, tanh-squashed mean (f32)."""
    x = state_ref[...]  # (TB, state_dim) f32

    # ---- trunk (tiny: state_dim -> 50), kept entirely in f32 ----
    h = jnp.dot(x, wt_ref[...], preferred_element_type=jnp.float32) + bt_ref[...]
    # Fused LN stats (single pass): var = E[h^2] - E[h]^2  (biased, like torch LN).
    mean = jnp.mean(h, axis=-1, keepdims=True)
    ex2 = jnp.mean(h * h, axis=-1, keepdims=True)
    var = jnp.maximum(ex2 - mean * mean, 0.0)
    h = (h - mean) * jax.lax.rsqrt(var + LN_EPS)
    h = jnp.tanh(h * lng_ref[...] + lnb_ref[...])

    # ---- policy MLP: bf16 operands on the MXU, f32 accumulate / bias / ReLU ----
    h = h.astype(jnp.bfloat16)
    h = jnp.maximum(
        jnp.dot(h, w1_ref[...], preferred_element_type=jnp.float32) + b1_ref[...], 0.0)
    h = h.astype(jnp.bfloat16)
    # w2 stored int8 (per-output-channel absmax); integer magnitudes <=127 are exact in
    # bf16, so the in-register cast costs no accuracy — the MXU consumes a bf16 operand
    # (portable incl. v7x) while HBM/VMEM only ever hold 1 MiB of int8.
    w2 = w2_ref[...].astype(jnp.bfloat16)
    h = jnp.dot(h, w2, preferred_element_type=jnp.float32) * w2s_ref[...] + b2_ref[...]
    h = jnp.maximum(h, 0.0)
    h = h.astype(jnp.bfloat16)
    mu = jnp.dot(h, w3_ref[...], preferred_element_type=jnp.float32) + b3_ref[...]
    return jnp.tanh(mu)


def musik_sample_kernel(std_ref, state_ref, noise_ref, *refs):
    """Training path: TruncatedNormal(mu, std).sample(clip=0.3)."""
    *param_refs, out_ref = refs
    mu = _forward_mu(state_ref, *param_refs)
    eps = jnp.clip(noise_ref[...] * std_ref[0], -NOISE_CLIP, NOISE_CLIP)
    out_ref[...] = jnp.clip(mu + eps, -1.0 + CLAMP_EPS, 1.0 - CLAMP_EPS)


def musik_eval_kernel(state_ref, *refs):
    """Eval path: dist.mean == tanh(mu); no noise / std input at all."""
    *param_refs, out_ref = refs
    out_ref[...] = _forward_mu(state_ref, *param_refs)


# ---------------------------------------------------------------------------
# wrapper
# ---------------------------------------------------------------------------
def _quantize_per_channel_int8(w):
    """Symmetric per-output-channel absmax int8 quantization (w: (in, out) f32)."""
    absmax = jnp.max(jnp.abs(w), axis=0, keepdims=True)          # (1, out)
    scale = jnp.where(absmax > 0.0, absmax / 127.0, 1.0)
    q = jnp.round(w / scale).astype(jnp.int8)
    return q, scale.astype(jnp.float32)


def musik_predictor(state, params, *, noise=None, std=0.1, eval_mode=False,
                    batch_tile=1024, quantize_w2=True,
                    vmem_limit_bytes=28 * 1024 * 1024):
    """Pallas forward of MUSIKPredictor.

    state: (B, state_dim) f32.  noise: (B, action_dim) f32 standard-normal draws
    (required unless eval_mode).  params: dict with wt/bt/lng/lnb/w1/b1/w2/b2/w3/b3.
    """
    B, state_dim = state.shape
    action_dim = params["w3"].shape[1]
    if not eval_mode and noise is None:
        raise ValueError("noise is required when eval_mode=False")

    # --- batch padding / tiling: tile is a multiple of 8 sublanes ---
    padded_b = -(-B // 8) * 8
    tb = min(batch_tile, padded_b)
    padded_b = -(-padded_b // tb) * tb
    n_tiles = padded_b // tb
    if padded_b != B:
        # NOTE: padded rows are all-zero.  They hit LayerNorm with var≈0, but
        # (h - mean) == 0 so 0 * rsqrt(eps) == 0 — finite, and the rows are sliced off
        # below.  Do not "fix" this into a divide-by-zero guard.
        pad = ((0, padded_b - B), (0, 0))
        state = jnp.pad(state, pad)
        if noise is not None:
            noise = jnp.pad(noise, pad)

    # --- parameters: int8 w2 (+ per-channel scale), bf16 w1/w3, f32 elsewhere ---
    if quantize_w2:
        w2q, w2s = _quantize_per_channel_int8(params["w2"].astype(jnp.float32))
    else:
        w2q = params["w2"].astype(jnp.bfloat16)
        w2s = jnp.ones((1, params["w2"].shape[1]), jnp.float32)

    flat = [
        params["wt"].astype(jnp.float32),
        params["bt"].astype(jnp.float32),
        params["lng"].astype(jnp.float32),
        params["lnb"].astype(jnp.float32),
        params["w1"].astype(jnp.bfloat16),
        params["b1"].astype(jnp.float32),
        w2q,
        w2s,
        params["b2"].astype(jnp.float32),
        params["w3"].astype(jnp.bfloat16),
        params["b3"].astype(jnp.float32),
    ]

    # Weights/biases: full-array blocks, constant index_map (DMA'd once, VMEM-resident
    # across all batch tiles), single-buffered — no point double-buffering a block that
    # never changes, and it halves the resident-param VMEM footprint.
    def full_spec(arr):
        nd = arr.ndim
        return pl.BlockSpec(arr.shape, lambda i, _nd=nd: (0,) * _nd,
                            pipeline_mode=pl.Buffered(1))

    param_specs = [full_spec(p) for p in flat]
    state_spec = pl.BlockSpec((tb, state_dim), lambda i: (i, 0))
    out_spec = pl.BlockSpec((tb, action_dim), lambda i: (i, 0))

    # "parallel" vs "arbitrary" has near-zero measured codegen impact; kept for the
    # multi-tile case.  Real v7x 2-core splitting would need core_parallel / core_map.
    semantics = ("parallel",) if n_tiles > 1 else ("arbitrary",)
    cparams = pltpu.CompilerParams(dimension_semantics=semantics,
                                   vmem_limit_bytes=vmem_limit_bytes)

    # Advisory cost so XLA can overlap the one-time parameter DMA with surrounding ops.
    param_bytes = sum(int(p.size) * p.dtype.itemsize for p in flat)
    io_bytes = int(state.size) * 4 + padded_b * action_dim * 4
    if not eval_mode:
        io_bytes += padded_b * action_dim * 4
    cost = pl.CostEstimate(
        flops=2 * padded_b * (state_dim * FEATURE_DIM + FEATURE_DIM * HIDDEN_DIM
                              + HIDDEN_DIM * HIDDEN_DIM + HIDDEN_DIM * action_dim),
        transcendentals=padded_b * (FEATURE_DIM + action_dim + 1),
        bytes_accessed=param_bytes + io_bytes,
    )

    out_shape = jax.ShapeDtypeStruct((padded_b, action_dim), jnp.float32)
    if eval_mode:
        out = pl.pallas_call(
            musik_eval_kernel,
            out_shape=out_shape,
            grid=(n_tiles,),
            in_specs=[state_spec] + param_specs,
            out_specs=out_spec,
            compiler_params=cparams,
            cost_estimate=cost,
        )(state, *flat)
    else:
        # std as an SMEM runtime scalar -> no Mosaic recompile per annealed std value.
        std_arr = jnp.asarray([std], jnp.float32)
        std_spec = pl.BlockSpec(memory_space=pltpu.MemorySpace.SMEM)
        noise_spec = pl.BlockSpec((tb, action_dim), lambda i: (i, 0))
        out = pl.pallas_call(
            musik_sample_kernel,
            out_shape=out_shape,
            grid=(n_tiles,),
            in_specs=[std_spec, state_spec, noise_spec] + param_specs,
            out_specs=out_spec,
            compiler_params=cparams,
            cost_estimate=cost,
        )(std_arr, state, noise, *flat)

    return out[:B] if padded_b != B else out


# ---------------------------------------------------------------------------
# synthetic params + pure-JAX reference
# ---------------------------------------------------------------------------
def init_params(key, state_dim, action_dim):
    """Deterministic synthetic parameters (shapes from the module __init__), f32."""
    ks = jax.random.split(key, 4)

    def lin(kw, fan_in, fan_out):
        return jax.random.normal(kw, (fan_in, fan_out), jnp.float32) / jnp.sqrt(fan_in)

    return {
        "wt": lin(ks[0], state_dim, FEATURE_DIM),
        "bt": jnp.zeros((1, FEATURE_DIM), jnp.float32),
        "lng": jnp.ones((1, FEATURE_DIM), jnp.float32),
        "lnb": jnp.zeros((1, FEATURE_DIM), jnp.float32),
        "w1": lin(ks[1], FEATURE_DIM, HIDDEN_DIM),
        "b1": jnp.zeros((1, HIDDEN_DIM), jnp.float32),
        "w2": lin(ks[2], HIDDEN_DIM, HIDDEN_DIM),
        "b2": jnp.zeros((1, HIDDEN_DIM), jnp.float32),
        "w3": lin(ks[3], HIDDEN_DIM, action_dim),
        "b3": jnp.zeros((1, action_dim), jnp.float32),
    }


def musik_reference(state, noise, params, *, std=0.1, eval_mode=False):
    """Pure-JAX f32 reference of the PyTorch forward."""
    h = state @ params["wt"] + params["bt"]
    mean = jnp.mean(h, axis=-1, keepdims=True)
    var = jnp.mean(jnp.square(h - mean), axis=-1, keepdims=True)
    h = (h - mean) / jnp.sqrt(var + LN_EPS)
    h = jnp.tanh(h * params["lng"] + params["lnb"])
    h = jnp.maximum(h @ params["w1"] + params["b1"], 0.0)
    h = jnp.maximum(h @ params["w2"] + params["b2"], 0.0)
    mu = jnp.tanh(h @ params["w3"] + params["b3"])
    if eval_mode:
        return mu
    eps = jnp.clip(noise * std, -NOISE_CLIP, NOISE_CLIP)
    return jnp.clip(mu + eps, -1.0 + CLAMP_EPS, 1.0 - CLAMP_EPS)


if __name__ == "__main__":
    key = jax.random.PRNGKey(0)
    k_param, k_state, k_noise, k_state2, k_noise2 = jax.random.split(key, 5)

    batch = 8
    state_dim = 24
    action_dim = 6
    max_action = 1.0  # unused in forward (matches PyTorch module)

    params = init_params(k_param, state_dim, action_dim)
    state = jax.random.normal(k_state, (batch, state_dim), jnp.float32)
    # TODO(synk): standard-normal noise is drawn in plain JAX and applied in-kernel
    # (in-kernel pltpu stateful PRNG sampling would not match torch RNG anyway).
    noise = jax.random.normal(k_noise, (batch, action_dim), jnp.float32)

    # stochastic (training) path: action = clamp(mu + clip(noise*std, ±0.3), ±(1-1e-6))
    action = musik_predictor(state, params, noise=noise, std=0.1, eval_mode=False)
    jax.block_until_ready(action)
    # eval path: action = dist.mean = tanh(mu); no noise / std inputs at all
    action_eval = musik_predictor(state, params, std=0.1, eval_mode=True)
    jax.block_until_ready(action_eval)

    ref = musik_reference(state, noise, params, std=0.1, eval_mode=False)
    ref_eval = musik_reference(state, noise, params, std=0.1, eval_mode=True)

    assert action.shape == (batch, action_dim)
    # bf16 MXU activations + int8 per-channel w2 storage -> looser tolerance vs f32 ref.
    assert jnp.allclose(action, ref, atol=3e-2, rtol=3e-2), "sample path mismatch"
    assert jnp.allclose(action_eval, ref_eval, atol=3e-2, rtol=3e-2), "eval path mismatch"

    # exercise the multi-tile batch-grid path (non-multiple-of-8 batch + padding).
    batch2 = 20
    state2 = jax.random.normal(k_state2, (batch2, state_dim), jnp.float32)
    noise2 = jax.random.normal(k_noise2, (batch2, action_dim), jnp.float32)
    action2 = musik_predictor(state2, params, noise=noise2, std=0.2,
                              eval_mode=False, batch_tile=8)
    jax.block_until_ready(action2)
    ref2 = musik_reference(state2, noise2, params, std=0.2, eval_mode=False)
    assert action2.shape == (batch2, action_dim)
    assert jnp.allclose(action2, ref2, atol=3e-2, rtol=3e-2), "tiled path mismatch"

    print("KERNEL_OK")
</pallas_src>

<mosaic_0001>
module attributes {stable_mosaic.version = 11 : i64} {
  func.func @musik_sample_kernel(%arg0: i32, %arg1: memref<1xf32, #tpu.memory_space<smem>>, %arg2: memref<8x24xf32, #tpu.memory_space<vmem>>, %arg3: memref<8x6xf32, #tpu.memory_space<vmem>>, %arg4: memref<24x50xf32, #tpu.memory_space<vmem>>, %arg5: memref<1x50xf32, #tpu.memory_space<vmem>>, %arg6: memref<1x50xf32, #tpu.memory_space<vmem>>, %arg7: memref<1x50xf32, #tpu.memory_space<vmem>>, %arg8: memref<50x1024xbf16, #tpu.memory_space<vmem>>, %arg9: memref<1x1024xf32, #tpu.memory_space<vmem>>, %arg10: memref<1024x1024xi8, #tpu.memory_space<vmem>>, %arg11: memref<1x1024xf32, #tpu.memory_space<vmem>>, %arg12: memref<1x1024xf32, #tpu.memory_space<vmem>>, %arg13: memref<1024x6xbf16, #tpu.memory_space<vmem>>, %arg14: memref<1x6xf32, #tpu.memory_space<vmem>>, %arg15: memref<8x6xf32, #tpu.memory_space<vmem>>) attributes {dimension_semantics = [#tpu.dimension_semantics<arbitrary>], iteration_bounds = array<i64: 1>, scalar_prefetch = 0 : i64, scratch_operands = 0 : i64, tpu.core_type = #tpu.core_type<tc>, window_params = [{transform_indices = @transform_0, window_bounds = array<i64: 1>}, {transform_indices = @transform_1, window_bounds = array<i64: 8, 24>}, {transform_indices = @transform_2, window_bounds = array<i64: 8, 6>}, {pipeline_mode = #tpu.pipeline_mode<synchronous>, transform_indices = @transform_3, window_bounds = array<i64: 24, 50>}, {pipeline_mode = #tpu.pipeline_mode<synchronous>, transform_indices = @transform_4, window_bounds = array<i64: 1, 50>}, {pipeline_mode = #tpu.pipeline_mode<synchronous>, transform_indices = @transform_5, window_bounds = array<i64: 1, 50>}, {pipeline_mode = #tpu.pipeline_mode<synchronous>, transform_indices = @transform_6, window_bounds = array<i64: 1, 50>}, {pipeline_mode = #tpu.pipeline_mode<synchronous>, transform_indices = @transform_7, window_bounds = array<i64: 50, 1024>}, {pipeline_mode = #tpu.pipeline_mode<synchronous>, transform_indices = @transform_8, window_bounds = array<i64: 1, 1024>}, {pipeline_mode = #tpu.pipeline_mode<synchronous>, transform_indices = @transform_9, window_bounds = array<i64: 1024, 1024>}, {pipeline_mode = #tpu.pipeline_mode<synchronous>, transform_indices = @transform_10, window_bounds = array<i64: 1, 1024>}, {pipeline_mode = #tpu.pipeline_mode<synchronous>, transform_indices = @transform_11, window_bounds = array<i64: 1, 1024>}, {pipeline_mode = #tpu.pipeline_mode<synchronous>, transform_indices = @transform_12, window_bounds = array<i64: 1024, 6>}, {pipeline_mode = #tpu.pipeline_mode<synchronous>, transform_indices = @transform_13, window_bounds = array<i64: 1, 6>}, {transform_indices = @transform_14, window_bounds = array<i64: 8, 6>}]} {
    %c0 = arith.constant 0 : index
    %c0_0 = arith.constant 0 : index
    %0 = vector.load %arg2[%c0, %c0_0] : memref<8x24xf32, #tpu.memory_space<vmem>>, vector<8x24xf32>
    %c0_1 = arith.constant 0 : index
    %c0_2 = arith.constant 0 : index
    %1 = vector.load %arg4[%c0_1, %c0_2] : memref<24x50xf32, #tpu.memory_space<vmem>>, vector<24x50xf32>
    %cst = arith.constant dense<0.000000e+00> : vector<8x50xf32>
    %2 = tpu.matmul %0, %1, %cst {dimension_numbers = #tpu.dot_dimension_numbers<[1], [0], [0], [1], [0, 0, 1, 1], [], []>} : vector<8x24xf32>, vector<24x50xf32>, vector<8x50xf32> -> vector<8x50xf32>
    %c0_3 = arith.constant 0 : index
    %c0_4 = arith.constant 0 : index
    %3 = vector.load %arg5[%c0_3, %c0_4] : memref<1x50xf32, #tpu.memory_space<vmem>>, vector<1x50xf32>
    %4 = vector.broadcast %3 : vector<1x50xf32> to vector<8x50xf32>
    %5 = arith.addf %2, %4 : vector<8x50xf32>
    %cst_5 = arith.constant dense<0.000000e+00> : vector<8xf32>
    %6 = vector.multi_reduction <add>, %5, %cst_5 [1] : vector<8x50xf32> to vector<8xf32>
    %7 = vector.shape_cast %6 : vector<8xf32> to vector<8x1xf32>
    %cst_6 = arith.constant 5.000000e+01 : f32
    %8 = vector.broadcast %cst_6 : f32 to vector<8x1xf32>
    %9 = arith.divf %7, %8 : vector<8x1xf32>
    %10 = arith.mulf %5, %5 : vector<8x50xf32>
    %cst_7 = arith.constant dense<0.000000e+00> : vector<8xf32>
    %11 = vector.multi_reduction <add>, %10, %cst_7 [1] : vector<8x50xf32> to vector<8xf32>
    %12 = vector.shape_cast %11 : vector<8xf32> to vector<8x1xf32>
    %cst_8 = arith.constant 5.000000e+01 : f32
    %13 = vector.broadcast %cst_8 : f32 to vector<8x1xf32>
    %14 = arith.divf %12, %13 : vector<8x1xf32>
    %15 = arith.mulf %9, %9 : vector<8x1xf32>
    %16 = arith.subf %14, %15 : vector<8x1xf32>
    %cst_9 = arith.constant 0.000000e+00 : f32
    %17 = vector.broadcast %cst_9 : f32 to vector<8x1xf32>
    %18 = arith.maximumf %16, %17 : vector<8x1xf32>
    %19 = vector.broadcast %9 : vector<8x1xf32> to vector<8x50xf32>
    %20 = arith.subf %5, %19 : vector<8x50xf32>
    %cst_10 = arith.constant 9.99999974E-6 : f32
    %21 = vector.broadcast %cst_10 : f32 to vector<8x1xf32>
    %22 = arith.addf %18, %21 : vector<8x1xf32>
    %23 = math.rsqrt %22 : vector<8x1xf32>
    %24 = vector.broadcast %23 : vector<8x1xf32> to vector<8x50xf32>
    %25 = arith.mulf %20, %24 : vector<8x50xf32>
    %c0_11 = arith.constant 0 : index
    %c0_12 = arith.constant 0 : index
    %26 = vector.load %arg6[%c0_11, %c0_12] : memref<1x50xf32, #tpu.memory_space<vmem>>, vector<1x50xf32>
    %27 = vector.broadcast %26 : vector<1x50xf32> to vector<8x50xf32>
    %28 = arith.mulf %25, %27 : vector<8x50xf32>
    %c0_13 = arith.constant 0 : index
    %c0_14 = arith.constant 0 : index
    %29 = vector.load %arg7[%c0_13, %c0_14] : memref<1x50xf32, #tpu.memory_space<vmem>>, vector<1x50xf32>
    %30 = vector.broadcast %29 : vector<1x50xf32> to vector<8x50xf32>
    %31 = arith.addf %28, %30 : vector<8x50xf32>
    %32 = math.tanh %31 : vector<8x50xf32>
    %33 = arith.truncf %32 : vector<8x50xf32> to vector<8x50xbf16>
    %c0_15 = arith.constant 0 : index
    %c0_16 = arith.constant 0 : index
    %34 = vector.load %arg8[%c0_15, %c0_16] : memref<50x1024xbf16, #tpu.memory_space<vmem>>, vector<50x1024xbf16>
    %cst_17 = arith.constant dense<0.000000e+00> : vector<8x1024xf32>
    %35 = tpu.matmul %33, %34, %cst_17 {dimension_numbers = #tpu.dot_dimension_numbers<[1], [0], [0], [1], [0, 0, 1, 1], [], []>} : vector<8x50xbf16>, vector<50x1024xbf16>, vector<8x1024xf32> -> vector<8x1024xf32>
    %c0_18 = arith.constant 0 : index
    %c0_19 = arith.constant 0 : index
    %36 = vector.load %arg9[%c0_18, %c0_19] : memref<1x1024xf32, #tpu.memory_space<vmem>>, vector<1x1024xf32>
    %37 = vector.broadcast %36 : vector<1x1024xf32> to vector<8x1024xf32>
    %38 = arith.addf %35, %37 : vector<8x1024xf32>
    %cst_20 = arith.constant 0.000000e+00 : f32
    %39 = vector.broadcast %cst_20 : f32 to vector<8x1024xf32>
    %40 = arith.maximumf %38, %39 : vector<8x1024xf32>
    %41 = arith.truncf %40 : vector<8x1024xf32> to vector<8x1024xbf16>
    %c0_21 = arith.constant 0 : index
    %c0_22 = arith.constant 0 : index
    %42 = vector.load %arg10[%c0_21, %c0_22] : memref<1024x1024xi8, #tpu.memory_space<vmem>>, vector<1024x1024xi8>
    %43 = arith.sitofp %42 : vector<1024x1024xi8> to vector<1024x1024xbf16>
    %cst_23 = arith.constant dense<0.000000e+00> : vector<8x1024xf32>
    %44 = tpu.matmul %41, %43, %cst_23 {dimension_numbers = #tpu.dot_dimension_numbers<[1], [0], [0], [1], [0, 0, 1, 1], [], []>} : vector<8x1024xbf16>, vector<1024x1024xbf16>, vector<8x1024xf32> -> vector<8x1024xf32>
    %c0_24 = arith.constant 0 : index
    %c0_25 = arith.constant 0 : index
    %45 = vector.load %arg11[%c0_24, %c0_25] : memref<1x1024xf32, #tpu.memory_space<vmem>>, vector<1x1024xf32>
    %46 = vector.broadcast %45 : vector<1x1024xf32> to vector<8x1024xf32>
    %47 = arith.mulf %44, %46 : vector<8x1024xf32>
    %c0_26 = arith.constant 0 : index
    %c0_27 = arith.constant 0 : index
    %48 = vector.load %arg12[%c0_26, %c0_27] : memref<1x1024xf32, #tpu.memory_space<vmem>>, vector<1x1024xf32>
    %49 = vector.broadcast %48 : vector<1x1024xf32> to vector<8x1024xf32>
    %50 = arith.addf %47, %49 : vector<8x1024xf32>
    %cst_28 = arith.constant 0.000000e+00 : f32
    %51 = vector.broadcast %cst_28 : f32 to vector<8x1024xf32>
    %52 = arith.maximumf %50, %51 : vector<8x1024xf32>
    %53 = arith.truncf %52 : vector<8x1024xf32> to vector<8x1024xbf16>
    %c0_29 = arith.constant 0 : index
    %c0_30 = arith.constant 0 : index
    %54 = vector.load %arg13[%c0_29, %c0_30] : memref<1024x6xbf16, #tpu.memory_space<vmem>>, vector<1024x6xbf16>
    %cst_31 = arith.constant dense<0.000000e+00> : vector<8x6xf32>
    %55 = tpu.matmul %53, %54, %cst_31 {dimension_numbers = #tpu.dot_dimension_numbers<[1], [0], [0], [1], [0, 0, 1, 1], [], []>} : vector<8x1024xbf16>, vector<1024x6xbf16>, vector<8x6xf32> -> vector<8x6xf32>
    %c0_32 = arith.constant 0 : index
    %c0_33 = arith.constant 0 : index
    %56 = vector.load %arg14[%c0_32, %c0_33] : memref<1x6xf32, #tpu.memory_space<vmem>>, vector<1x6xf32>
    %57 = vector.broadcast %56 : vector<1x6xf32> to vector<8x6xf32>
    %58 = arith.addf %55, %57 : vector<8x6xf32>
    %59 = math.tanh %58 : vector<8x6xf32>
    %c0_34 = arith.constant 0 : index
    %c0_35 = arith.constant 0 : index
    %60 = vector.load %arg3[%c0_34, %c0_35] : memref<8x6xf32, #tpu.memory_space<vmem>>, vector<8x6xf32>
    %c0_36 = arith.constant 0 : index
    %61 = memref.load %arg1[%c0_36] : memref<1xf32, #tpu.memory_space<smem>>
    %62 = vector.broadcast %61 : f32 to vector<8x6xf32>
    %63 = arith.mulf %60, %62 : vector<8x6xf32>
    %cst_37 = arith.constant -3.000000e-01 : f32
    %cst_38 = arith.constant 3.000000e-01 : f32
    %64 = vector.broadcast %cst_37 : f32 to vector<8x6xf32>
    %65 = arith.maximumf %64, %63 : vector<8x6xf32>
    %66 = vector.broadcast %cst_38 : f32 to vector<8x6xf32>
    %67 = arith.minimumf %66, %65 : vector<8x6xf32>
    %68 = arith.addf %59, %67 : vector<8x6xf32>
    %cst_39 = arith.constant -0.999998986 : f32
    %cst_40 = arith.constant 0.999998986 : f32
    %69 = vector.broadcast %cst_39 : f32 to vector<8x6xf32>
    %70 = arith.maximumf %69, %68 : vector<8x6xf32>
    %71 = vector.broadcast %cst_40 : f32 to vector<8x6xf32>
    %72 = arith.minimumf %71, %70 : vector<8x6xf32>
    %c0_41 = arith.constant 0 : index
    %c0_42 = arith.constant 0 : index
    %73 = vector.load %arg15[%c0_41, %c0_42] : memref<8x6xf32, #tpu.memory_space<vmem>>, vector<8x6xf32>
    tpu.vector_store %arg15[%c0_41, %c0_42], %72 {strides = array<i32>} : memref<8x6xf32, #tpu.memory_space<vmem>>, vector<8x6xf32>,
    return
  }
  func.func @transform_0(%arg0: i32) -> i32 {
    %c0_i32 = arith.constant 0 : i32
    %c0_i32_0 = arith.constant 0 : i32
    return %c0_i32 : i32
  }
  func.func @transform_1(%arg0: i32) -> (i32, i32) {
    %c0_i32 = arith.constant 0 : i32
    %c0_i32_0 = arith.constant 0 : i32
    return %arg0, %c0_i32 : i32, i32
  }
  func.func @transform_2(%arg0: i32) -> (i32, i32) {
    %c0_i32 = arith.constant 0 : i32
    %c0_i32_0 = arith.constant 0 : i32
    return %arg0, %c0_i32 : i32, i32
  }
  func.func @transform_3(%arg0: i32) -> (i32, i32) {
    %c0_i32 = arith.constant 0 : i32
    %c0_i32_0 = arith.constant 0 : i32
    %c0_i32_1 = arith.constant 0 : i32
    return %c0_i32, %c0_i32_0 : i32, i32
  }
  func.func @transform_4(%arg0: i32) -> (i32, i32) {
    %c0_i32 = arith.constant 0 : i32
    %c0_i32_0 = arith.constant 0 : i32
    %c0_i32_1 = arith.constant 0 : i32
    return %c0_i32, %c0_i32_0 : i32, i32
  }
  func.func @transform_5(%arg0: i32) -> (i32, i32) {
    %c0_i32 = arith.constant 0 : i32
    %c0_i32_0 = arith.constant 0 : i32
    %c0_i32_1 = arith.constant 0 : i32
    return %c0_i32, %c0_i32_0 : i32, i32
  }
  func.func @transform_6(%arg0: i32) -> (i32, i32) {
    %c0_i32 = arith.constant 0 : i32
    %c0_i32_0 = arith.constant 0 : i32
    %c0_i32_1 = arith.constant 0 : i32
    return %c0_i32, %c0_i32_0 : i32, i32
  }
  func.func @transform_7(%arg0: i32) -> (i32, i32) {
    %c0_i32 = arith.constant 0 : i32
    %c0_i32_0 = arith.constant 0 : i32
    %c0_i32_1 = arith.constant 0 : i32
    return %c0_i32, %c0_i32_0 : i32, i32
  }
  func.func @transform_8(%arg0: i32) -> (i32, i32) {
    %c0_i32 = arith.constant 0 : i32
    %c0_i32_0 = arith.constant 0 : i32
    %c0_i32_1 = arith.constant 0 : i32
    return %c0_i32, %c0_i32_0 : i32, i32
  }
  func.func @transform_9(%arg0: i32) -> (i32, i32) {
    %c0_i32 = arith.constant 0 : i32
    %c0_i32_0 = arith.constant 0 : i32
    %c0_i32_1 = arith.constant 0 : i32
    return %c0_i32, %c0_i32_0 : i32, i32
  }
  func.func @transform_10(%arg0: i32) -> (i32, i32) {
    %c0_i32 = arith.constant 0 : i32
    %c0_i32_0 = arith.constant 0 : i32
    %c0_i32_1 = arith.constant 0 : i32
    return %c0_i32, %c0_i32_0 : i32, i32
  }
  func.func @transform_11(%arg0: i32) -> (i32, i32) {
    %c0_i32 = arith.constant 0 : i32
    %c0_i32_0 = arith.constant 0 : i32
    %c0_i32_1 = arith.constant 0 : i32
    return %c0_i32, %c0_i32_0 : i32, i32
  }
  func.func @transform_12(%arg0: i32) -> (i32, i32) {
    %c0_i32 = arith.constant 0 : i32
    %c0_i32_0 = arith.constant 0 : i32
    %c0_i32_1 = arith.constant 0 : i32
    return %c0_i32, %c0_i32_0 : i32, i32
  }
  func.func @transform_13(%arg0: i32) -> (i32, i32) {
    %c0_i32 = arith.constant 0 : i32
    %c0_i32_0 = arith.constant 0 : i32
    %c0_i32_1 = arith.constant 0 : i32
    return %c0_i32, %c0_i32_0 : i32, i32
  }
  func.func @transform_14(%arg0: i32) -> (i32, i32) {
    %c0_i32 = arith.constant 0 : i32
    %c0_i32_0 = arith.constant 0 : i32
    return %arg0, %c0_i32 : i32, i32
  }
}

</mosaic_0001>

<bundles_post_ra>
// kernel: tpu_custom_call.1
= control target key start
LH: loop header
LB: loop body
LE: loop exit
PB: predicated region body
PF: predicated region fallthrough
CT: control target
= control target key end

     0   :  { %20 = vsyncpa [#allocation4], 0  ;;  %s3862_s0 = inlined_call_operand.<no memory space> [shape: f32[1], index: 0, kind: input, shape index: {}]   ;;  %s3863_s1 = inlined_call_operand.vmem [shape: f32[8,24], index: 1, kind: input, shape index: {}]   ;;  %s3864_s2 = inlined_call_operand.vmem [shape: f32[8,6], index: 2, kind: input, shape index: {}]   ;;  %s3865_s3 = inlined_call_operand.vmem [shape: f32[24,50], index: 3, kind: input, shape index: {}]   ;;  %s3866_s4 = inlined_call_operand.vmem [shape: f32[1,50], index: 4, kind: input, shape index: {}]   ;;  %s3867_s5 = inlined_call_operand.vmem [shape: f32[1,50], index: 5, kind: input, shape index: {}]   ;;  %s3868_s6 = inlined_call_operand.vmem [shape: f32[1,50], index: 6, kind: input, shape index: {}]   ;;  %s3869_s7 = inlined_call_operand.vmem [shape: bf16[50,1024], index: 7, kind: input, shape index: {}]   ;;  %s3870_s8 = inlined_call_operand.vmem [shape: f32[1,1024], index: 8, kind: input, shape index: {}]   ;;  %s3871_s9 = inlined_call_operand.hbm [shape: s8[1024,1024], index: 9, kind: input, shape index: {}]   ;;  %s3872_s10 = inlined_call_operand.vmem [shape: f32[1,1024], index: 10, kind: input, shape index: {}]   ;;  %s3873_s11 = inlined_call_operand.vmem [shape: f32[1,1024], index: 11, kind: input, shape index: {}]   ;;  %s3874_s12 = inlined_call_operand.vmem [shape: bf16[1024,6], index: 12, kind: input, shape index: {}]   ;;  %s3875_s13 = inlined_call_operand.vmem [shape: f32[1,6], index: 13, kind: input, shape index: {}]   ;;  %s3876_s14 = inlined_call_operand.hbm [shape: f32[8,6], index: 14, kind: output, shape index: {}]  }
   0x1   :  { %21 = vsyncpa [#allocation5], 0  ;;  %s3247_s29 = smov [#allocation3]   ;;  %s3199_s17 = scalar_lea.hbm %s3871_s9, 32768 }
   0x2   :  { %s45_s30 = sshll.u32 %s3247_s29, 4  ;;  %p3200_p0 = scmp.ne.s32.totalorder %s3871_s9, %s3199_s17  ;;  %s46_s30 = int_to_ptr.vmem [resolvable:$true] %s45_s30 }
   0x3   :  { %p3203_p1 = scmp.lt.u32.totalorder %s3199_s17, %s3871_s9 }
   0x5   :  { %p3205_p2 = pnand %p3203_p1, %p3200_p0 }
   0x7   :  { %3208 = shalt.err (!%p3205_p2)
}
   0x8   :  { %s3209_s22 = scalar_lea.vmem %s46_s30, 32768  ;;  %p3214_p4 = scmp.lt.s32.totalorder %s46_s30, %s46_s30 }
   0x9   :  { %p3210_p3 = scmp.ne.s32.totalorder %s46_s30, %s3209_s22  ;;  %p3215_p5 = scmp.lt.s32.totalorder %s3209_s22, %s3209_s22 }
   0xb   :  { %p3216_p6 = por %p3215_p5, %p3214_p4 }
   0xd   :  { %p3217_p7 = pnand %p3216_p6, %p3210_p3 }
   0xf   :  { %3220 = shalt.err (!%p3217_p7)
}
  0x10   :  { %s3248_s23 = smov 1024   ;;  %s3249_s24 = smov 64  }
  0x11   :  { %51 = dma.hbm_to_vmem [thread:$0]  %s3871_s9, 32768, %s46_s30, [#allocation4], %s3248_s23, %s3248_s23, %s3249_s24  }
  0x12   :  { %3243 = dma.done.wait [#allocation4], 32768  }
  0x13   :  { %3244 = vsyncadd [#allocation4], 4294934528  ;;  %v3250_v0 = vmov 0.0|0.0   ;;  %vm3251_vm0 = vmmov 0   ;;  %v3252_v1 = vmov 0.0   ;;  %v65_v2 = vld [vmem:[%s3865_s3] sm:$0xff] }
  0x14   :  { %3061 = vmatprep.subr.bf16.mxu0 %v3250_v0  ;;  %3058 = vmatprep.mubr.msk.f32.mxu0 %vm3251_vm0, %v3252_v1  ;;  %v66_v3 = vld [vmem:[%s3865_s3 + $0x8] sm:$0xff]  ;;  %vm75_vm1 = vcmask 195584   ;;  %v67_v5 = vld [vmem:[%s3865_s3 + $0x10] sm:$0xff]  ;;  %v64_v6 = vld [vmem:[%s3863_s1] sm:$0xff]  ;;  %vm149_vm2 = vcmask 408576   ;;  %v3253_v28 = vmov 0  }
  0x15   :  { %v3062_v4 = vpack.c.bf16 %v66_v3, %v65_v2  ;;  %v2849_v7 = vld [vmem:[%s3866_s4] ss:$0 sm:$0xff]  ;;  %v186_v16 = vld [vmem:[%s3869_s7 + $0x8] sm:$0xff]  ;;  %455 = vmatprep.mubr.bf16.mxu1 %v3253_v28  ;;  %v3405_v34 = vld [vmem:[%s3869_s7 + $0x10] sm:$0xff]  ;;  %vm398_vm3 = vcmask 1040384   ;;  %s3254_s21 = smov [#allocation6]  }
  0x16   :  { %v185_v14 = vld [vmem:[%s3869_s7] sm:$0xff]  ;;  %v190_v18 = vld [vmem:[%s3869_s7 + $0x28] sm:$0xff]  ;;  %v3410_v37 = vld [vmem:[%s3869_s7 + $0x30] sm:$0xff]  ;;  %s2840_s22 = sshll.u32 %s3254_s21, 4  ;;  %vm2832_vm4 = vcmask 48128   ;;  %s2841_s22 = int_to_ptr.vmem [resolvable:$true] %s2840_s22 }
  0x17   :  { %3063 = vmatpush3.bf16.msra.mxu0 %v3062_v4  ;;  %v189_v15 = vld [vmem:[%s3869_s7 + $0x20] sm:$0xff]  ;;  %v2855_v22 = vcombine.low %v186_v16, %v190_v18  ;;  %v2856_v23 = vcombine.high %v186_v16, %v190_v18  ;;  %v194_v25 = vld [vmem:[%s3869_s7 + $0x48] sm:$0xff]  ;;  %v3415_v38 = vld [vmem:[%s3869_s7 + $0x18] sm:$0xff]  ;;  %v2857_v42 = vcombine.low %v3405_v34, %v3410_v37  ;;  %v2858_v52 = vcombine.high %v3405_v34, %v3410_v37  ;;  %p3226_p9 = scmp.lt.s32.totalorder %s2841_s22, %s2841_s22 }
  0x18   :  { %3056 = vmatprep.subr.mxu0 %v3252_v1  ;;  %v2854_v17 = vcombine.high %v185_v14, %v189_v15  ;;  %v2853_v19 = vcombine.low %v185_v14, %v189_v15  ;;  %v193_v20 = vld [vmem:[%s3869_s7 + $0x40] sm:$0xff]  ;;  %v198_v26 = vld [vmem:[%s3869_s7 + $0x68] sm:$0xff]  ;;  %v192_v39 = vld [vmem:[%s3869_s7 + $0x38] sm:$0xff] }
  0x19   :  { %v197_v21 = vld [vmem:[%s3869_s7 + $0x60] sm:$0xff]  ;;  %v2864_v29 = vcombine.high %v194_v25, %v198_v26  ;;  %v202_v31 = vld [vmem:[%s3869_s7 + $0x88] sm:$0xff]  ;;  %v2863_v35 = vcombine.low %v194_v25, %v198_v26  ;;  %v2859_v44 = vcombine.low %v3415_v38, %v192_v39  ;;  %v2860_v54 = vcombine.high %v3415_v38, %v192_v39  ;;  %v203_v14 = vld [vmem:[%s3869_s7 + $0x90] sm:$0xff] }
  0x1a   :  { %v2862_v24 = vcombine.high %v193_v20, %v197_v21  ;;  %v201_v27 = vld [vmem:[%s3869_s7 + $0x80] sm:$0xff]  ;;  %423 = vmatprep.subr.bf16.mxu1 %v2854_v17  ;;  %v206_v32 = vld [vmem:[%s3869_s7 + $0xa8] sm:$0xff]  ;;  %v2861_v33 = vcombine.low %v193_v20, %v197_v21  ;;  %v207_v15 = vld [vmem:[%s3869_s7 + $0xb0] sm:$0xff] }
  0x1b   :  { %3057 = vmatpush3.msra.mxu0 %v67_v5  ;;  %v205_v30 = vld [vmem:[%s3869_s7 + $0xa0] sm:$0xff]  ;;  %424 = vmatpush1.bf16.msra.mxu1 %v2853_v19  ;;  %v2872_v40 = vcombine.high %v202_v31, %v206_v32  ;;  %v210_v43 = vld [vmem:[%s3869_s7 + $0xc8] sm:$0x11]  ;;  %v2871_v46 = vcombine.low %v202_v31, %v206_v32  ;;  %v204_v16 = vld [vmem:[%s3869_s7 + $0x98] sm:$0xff]  ;;  %v2874_v20 = vcombine.high %v203_v14, %v207_v15 }
  0x1c   :  { %3059 = vmatmul.mubr.msk.f32.vlgmr.msra.gmra.mrb[0].mxu0 %vm75_vm1, %v64_v6  ;;  %464 = vmatprep.subr.bf16.mxu0 %v2856_v23  ;;  %v2870_v36 = vcombine.high %v201_v27, %v205_v30  ;;  %v209_v41 = vld [vmem:[%s3869_s7 + $0xc0] sm:$0x11]  ;;  %v2869_v45 = vcombine.low %v201_v27, %v205_v30  ;;  %v2880_v49 = vcombine.high %v210_v43, %v210_v43  ;;  %v195_v6 = vld [vmem:[%s3869_s7 + $0x50] sm:$0xff]  ;;  %v208_v17 = vld [vmem:[%s3869_s7 + $0xb8] sm:$0xff] }
  0x1d   :  { %496 = vmatprep.mubr.bf16.mxu0 %v3253_v28  ;;  %465 = vmatpush1.bf16.msra.mxu0 %v2855_v22  ;;  %v2878_v47 = vcombine.high %v209_v41, %v209_v41  ;;  %v2877_v48 = vcombine.low %v209_v41, %v209_v41  ;;  %v2879_v50 = vcombine.low %v210_v43, %v210_v43  ;;  %v2851_v1 = vld [vmem:[%s3867_s5] ss:$0 sm:$0xff]  ;;  %v211_v22 = vld [vmem:[%s3869_s7 + $0xd0] sm:$0x11]  ;;  %v212_v23 = vld [vmem:[%s3869_s7 + $0xd8] sm:$0x11] }
  0x1e   :  { %425 = vmatprep.subr.bf16.mxu1 %v2862_v24  ;;  %466 = vmatprep.subr.bf16.mxu0 %v2864_v29  ;;  %v2852_v3 = vld [vmem:[%s3868_s6] ss:$0 sm:$0xff]  ;;  %v2876_v21 = vcombine.high %v204_v16, %v208_v17  ;;  %v2873_v24 = vcombine.low %v203_v14, %v207_v15  ;;  %v2875_v25 = vcombine.low %v204_v16, %v208_v17  ;;  %v604_v31 = vld [vmem:[#allocation3 + $0x8] sm:$0xff]  ;;  %v606_v32 = vld [vmem:[#allocation3 + $0x18] sm:$0xff]  ;;  %s3221_s5 = scalar_lea.vmem %s2841_s22, 128 }
  0x1f   :  { %426 = vmatpush1.bf16.msra.mxu1 %v2861_v33  ;;  %v400_v51 = vsel %vm398_vm3, %v2877_v48, 0  ;;  %v406_v53 = vsel %vm398_vm3, %v2879_v50, 0  ;;  %v2882_v26 = vcombine.high %v211_v22, %v211_v22  ;;  %v2884_v27 = vcombine.high %v212_v23, %v212_v23  ;;  %v605_v37 = vld [vmem:[#allocation3 + $0x10] sm:$0xff]  ;;  %v614_v43 = vld [vmem:[#allocation3 + $0x58] sm:$0xff]  ;;  %v611_v48 = vld [vmem:[#allocation3 + $0x40] sm:$0xff]  ;;  %p3222_p8 = scmp.ne.s32.totalorder %s2841_s22, %s3221_s5  ;;  %p3227_p10 = scmp.lt.s32.totalorder %s3221_s5, %s3221_s5 }
  0x20   :  { %427 = vmatprep.subr.bf16.mxu1 %v2870_v36  ;;  %v2881_v29 = vcombine.low %v211_v22, %v211_v22  ;;  %v2883_v30 = vcombine.low %v212_v23, %v212_v23  ;;  %v860_v34 = vunpack.c.l.s8.bf16 %v604_v31  ;;  %v603_v36 = vld [vmem:[#allocation3] sm:$0xff]  ;;  %v861_v39 = vunpack.c.l.s8.bf16 %v605_v37  ;;  %v636_v14 = vld [vmem:[#allocation3 + $0x108] sm:$0xff]  ;;  %v638_v15 = vld [vmem:[#allocation3 + $0x118] sm:$0xff] }
  0x21   :  { %467 = vmatpush1.bf16.msra.mxu0 %v2863_v35  ;;  %v862_v35 = vunpack.c.l.s8.bf16 %v606_v32  ;;  %v859_v38 = vunpack.c.l.s8.bf16 %v603_v36  ;;  %v870_v41 = vunpack.c.h.s8.bf16 %v606_v32  ;;  %v875_v50 = vunpack.c.l.s8.bf16 %v611_v48  ;;  %p3228_p11 = por %p3227_p10, %p3226_p9 }
  0x22   :  { %468 = vmatprep.subr.bf16.mxu0 %v2872_v40  ;;  %v418_v33 = vsel %vm398_vm3, %v2883_v30, 0  ;;  %v868_v40 = vunpack.c.h.s8.bf16 %v604_v31 }
  0x23   :  { %428 = vmatpush1.bf16.msra.mxu1 %v2869_v45  ;;  %v869_v45 = vunpack.c.h.s8.bf16 %v605_v37  ;;  %p3229_p12 = pnand %p3228_p11, %p3222_p8 }
  0x24   :  { %2885 = vmatprep.subr.msk.bf16.mxu1 %vm398_vm3, %v2878_v47  ;;  %v878_v47 = vunpack.c.l.s8.bf16 %v614_v43 }
  0x25   :  { %469 = vmatpush1.bf16.msra.mxu0 %v2871_v46 }
  0x26   :  { %2887 = vmatprep.subr.msk.bf16.mxu0 %vm398_vm3, %v2880_v49  ;;  %v613_v49 = vld [vmem:[#allocation3 + $0x50] sm:$0xff] }
  0x27   :  { %430 = vmatpush1.bf16.msra.mxu1 %v400_v51  ;;  %v877_v51 = vunpack.c.l.s8.bf16 %v613_v49 }
  0x28   :  { %505 = vmatprep.subr.bf16.mxu1 %v2858_v52 }
  0x29   :  { %471 = vmatpush1.bf16.msra.mxu0 %v406_v53  ;;  %v886_v53 = vunpack.c.h.s8.bf16 %v614_v43 }
  0x2a   :  { %546 = vmatprep.subr.bf16.mxu0 %v2860_v54  ;;  %v620_v54 = vld [vmem:[#allocation3 + $0x88] sm:$0xff] }
  0xef   :  { %v145_v8 = vpop.f32.mrb[0].mxu0 }
  0xf0   :  { %v3357_v9 = vadd.f32 %v2849_v7, %v145_v8  ;;  %v3060_v10 = vpop.f32.mrb[1].mxu0  ;;  %v199_v7 = vld [vmem:[%s3869_s7 + $0x70] sm:$0xff]  ;;  %v196_v8 = vld [vmem:[%s3869_s7 + $0x58] sm:$0xff] }
  0xf1   :  { %v2865_v18 = vcombine.low %v195_v6, %v199_v7 }
  0xf2   :  { %v150_v11 = vsel %vm149_vm2, %v3357_v9, 0.0  ;;  %v155_v12 = vmul.f32 %v3357_v9, %v3357_v9 }
  0xf3   :  { %151 = vadd.xlane.f32.xlu0 %v150_v11 }
  0xf4   :  { %v156_v13 = vsel %vm149_vm2, %v155_v12, 0.0  ;;  %v2866_v12 = vcombine.high %v195_v6, %v199_v7 }
  0xf7   :  { %157 = vadd.xlane.f32.xlu0 %v156_v13 }
 0x180   :  { %v152_v55 = vpop.xlane.xlu0 %151 }
 0x181   :  { %v154_v56 = vmul.f32 0.02, %v152_v55  ;;  %v622_v55 = vld [vmem:[#allocation3 + $0x98] sm:$0xff] }
 0x183   :  { %v160_v58 = vmul.f32 %v154_v56, %v154_v56  ;;  %v163_v63 = vsub.f32 %v3357_v9, %v154_v56  ;;  %v200_v9 = vld [vmem:[%s3869_s7 + $0x78] sm:$0xff]  ;;  %v883_v56 = vunpack.c.h.s8.bf16 %v611_v48 }
 0x184   :  { %v158_v57 = vpop.xlane.xlu0 %157  ;;  %v2868_v13 = vcombine.high %v196_v8, %v200_v9  ;;  %v2867_v19 = vcombine.low %v196_v8, %v200_v9  ;;  %v627_v8 = vld [vmem:[#allocation3 + $0xc0] sm:$0xff]  ;;  %v629_v9 = vld [vmem:[#allocation3 + $0xd0] sm:$0xff] }
 0x185   :  { %v159_v59 = vmul.f32 0.02, %v158_v57  ;;  %v885_v57 = vunpack.c.h.s8.bf16 %v613_v49  ;;  %v915_v16 = vunpack.c.h.s8.bf16 %v627_v8  ;;  %v917_v17 = vunpack.c.h.s8.bf16 %v629_v9 }
 0x187   :  { %v161_v60 = vsub.f32 %v159_v59, %v160_v58  ;;  %v892_v58 = vunpack.c.l.s8.bf16 %v620_v54  ;;  %v894_v59 = vunpack.c.l.s8.bf16 %v622_v55 }
 0x189   :  { %v162_v61 = vmax.f32 %v161_v60, 0.0  ;;  %v619_v60 = vld [vmem:[#allocation3 + $0x80] sm:$0xff] }
 0x18b   :  { %v164_v62 = vadd.f32 1e-05, %v162_v61  ;;  %v621_v61 = vld [vmem:[#allocation3 + $0x90] sm:$0xff] }
 0x18d   :  { %3192 = vrsqrt.f32 %v164_v62  ;;  %v891_v62 = vunpack.c.l.s8.bf16 %v619_v60 }
 0x197   :  { %v3193_v0 = vpop.eup %3192 }
 0x198   :  { %v166_v2 = vmul.f32 %v3193_v0, %v163_v63  ;;  %v893_v63 = vunpack.c.l.s8.bf16 %v621_v61  ;;  %v900_v0 = vunpack.c.h.s8.bf16 %v620_v54 }
 0x19a   :  { %v174_v4 = vmul.f32 %v2851_v1, %v166_v2  ;;  %v902_v1 = vunpack.c.h.s8.bf16 %v622_v55  ;;  %v628_v2 = vld [vmem:[#allocation3 + $0xc8] sm:$0xff] }
 0x19b   :  { %v908_v6 = vunpack.c.l.s8.bf16 %v628_v2 }
 0x19c   :  { %v182_v5 = vadd.f32 %v2852_v3, %v174_v4  ;;  %v630_v3 = vld [vmem:[#allocation3 + $0xd8] sm:$0xff]  ;;  %v899_v4 = vunpack.c.h.s8.bf16 %v619_v60 }
 0x19d   :  { %v910_v7 = vunpack.c.l.s8.bf16 %v630_v3 }
 0x19e   :  { %3194 = vtanh.f32 %v182_v5  ;;  %v901_v5 = vunpack.c.h.s8.bf16 %v621_v61 }
 0x1a8   :  { %v3195_v10 = vpop.eup %3194 }
 0x1a9   :  { %v184_v11 = vpack.c.bf16 %v3195_v10, %v3195_v10  ;;  %v907_v10 = vunpack.c.l.s8.bf16 %v627_v8 }
 0x1ab   :  { %2886 = vmatmul.mubr.msk.bf16.vlgmr.msra.gmra.mrb[0].mxu1 %vm149_vm2, %v184_v11  ;;  %2888 = vmatmul.mubr.msk.bf16.vlgmr.msra.gmra.mrb[4].mxu0 %vm149_vm2, %v184_v11 }
 0x1ac   :  { %506 = vmatpush1.bf16.msra.mxu1 %v2857_v42  ;;  %547 = vmatpush1.bf16.msra.mxu0 %v2859_v44  ;;  %v612_v42 = vld [vmem:[#allocation3 + $0x48] sm:$0xff]  ;;  %v867_v44 = vunpack.c.h.s8.bf16 %v603_v36 }
 0x1ad   :  { %507 = vmatprep.subr.bf16.mxu1 %v2866_v12  ;;  %548 = vmatprep.subr.bf16.mxu0 %v2868_v13  ;;  %v876_v46 = vunpack.c.l.s8.bf16 %v612_v42  ;;  %v884_v52 = vunpack.c.h.s8.bf16 %v612_v42  ;;  %v916_v12 = vunpack.c.h.s8.bf16 %v628_v2  ;;  %v918_v13 = vunpack.c.h.s8.bf16 %v630_v3 }
 0x1ae   :  { %537 = vmatprep.mubr.bf16.mxu1 %v3253_v28  ;;  %578 = vmatprep.mubr.bf16.mxu0 %v3253_v28  ;;  %v412_v28 = vsel %vm398_vm3, %v2881_v29, 0 }
 0x1b0   :  { %508 = vmatpush1.bf16.msra.mxu1 %v2865_v18  ;;  %549 = vmatpush1.bf16.msra.mxu0 %v2867_v19  ;;  %v924_v18 = vunpack.c.l.s8.bf16 %v636_v14  ;;  %v926_v19 = vunpack.c.l.s8.bf16 %v638_v15 }
 0x1b1   :  { %509 = vmatprep.subr.bf16.mxu1 %v2874_v20  ;;  %550 = vmatprep.subr.bf16.mxu0 %v2876_v21  ;;  %v635_v20 = vld [vmem:[#allocation3 + $0x100] sm:$0xff]  ;;  %v637_v21 = vld [vmem:[#allocation3 + $0x110] sm:$0xff] }
 0x1b2   :  { %v923_v22 = vunpack.c.l.s8.bf16 %v635_v20  ;;  %v925_v23 = vunpack.c.l.s8.bf16 %v637_v21  ;;  %v931_v29 = vunpack.c.h.s8.bf16 %v635_v20  ;;  %v933_v30 = vunpack.c.h.s8.bf16 %v637_v21 }
 0x1b4   :  { %510 = vmatpush1.bf16.msra.mxu1 %v2873_v24  ;;  %551 = vmatpush1.bf16.msra.mxu0 %v2875_v25  ;;  %v932_v24 = vunpack.c.h.s8.bf16 %v636_v14  ;;  %v934_v25 = vunpack.c.h.s8.bf16 %v638_v15 }
 0x1b5   :  { %2889 = vmatprep.subr.msk.bf16.mxu1 %vm398_vm3, %v2882_v26  ;;  %2891 = vmatprep.subr.msk.bf16.mxu0 %vm398_vm3, %v2884_v27  ;;  %v644_v26 = vld [vmem:[#allocation3 + $0x148] sm:$0xff]  ;;  %v646_v27 = vld [vmem:[#allocation3 + $0x158] sm:$0xff] }
 0x1b6   :  { %v940_v31 = vunpack.c.l.s8.bf16 %v644_v26  ;;  %v942_v32 = vunpack.c.l.s8.bf16 %v646_v27  ;;  %v948_v36 = vunpack.c.h.s8.bf16 %v644_v26  ;;  %v950_v37 = vunpack.c.h.s8.bf16 %v646_v27  ;;  %v669_v26 = vld [vmem:[#allocation3 + $0x210] sm:$0xff] }
 0x1b8   :  { %512 = vmatpush1.bf16.msra.mxu1 %v412_v28  ;;  %553 = vmatpush1.bf16.msra.mxu0 %v418_v33  ;;  %v643_v28 = vld [vmem:[#allocation3 + $0x140] sm:$0xff]  ;;  %v645_v33 = vld [vmem:[#allocation3 + $0x150] sm:$0xff] }
 0x1b9   :  { %1371 = vmatprep.subr.bf16.mxu1 %v860_v34  ;;  %1535 = vmatprep.subr.bf16.mxu0 %v862_v35  ;;  %v939_v34 = vunpack.c.l.s8.bf16 %v643_v28  ;;  %v941_v35 = vunpack.c.l.s8.bf16 %v645_v33 }
 0x1bb   :  { %2890 = vmatmul.mubr.msk.bf16.vlgmr.msra.gmra.mrb[4].mxu1 %vm149_vm2, %v184_v11  ;;  %2892 = vmatmul.mubr.msk.bf16.vlgmr.msra.gmra.mrb[8].mxu0 %vm149_vm2, %v184_v11  ;;  %v909_v11 = vunpack.c.l.s8.bf16 %v629_v9 }
 0x1bc   :  { %1372 = vmatpush1.bf16.msra.mxu1 %v859_v38  ;;  %1536 = vmatpush1.bf16.msra.mxu0 %v861_v39  ;;  %v652_v38 = vld [vmem:[#allocation3 + $0x188] sm:$0xff]  ;;  %v654_v39 = vld [vmem:[#allocation3 + $0x198] sm:$0xff] }
 0x1bd   :  { %1373 = vmatprep.subr.bf16.mxu1 %v868_v40  ;;  %1537 = vmatprep.subr.bf16.mxu0 %v870_v41  ;;  %v947_v40 = vunpack.c.h.s8.bf16 %v643_v28  ;;  %v949_v41 = vunpack.c.h.s8.bf16 %v645_v33  ;;  %v956_v42 = vunpack.c.l.s8.bf16 %v652_v38  ;;  %v958_v43 = vunpack.c.l.s8.bf16 %v654_v39 }
 0x1be   :  { %v964_v48 = vunpack.c.h.s8.bf16 %v652_v38  ;;  %v966_v49 = vunpack.c.h.s8.bf16 %v654_v39  ;;  %v997_v39 = vunpack.c.h.s8.bf16 %v669_v26 }
 0x1c0   :  { %1374 = vmatpush1.bf16.msra.mxu1 %v867_v44  ;;  %1538 = vmatpush1.bf16.msra.mxu0 %v869_v45  ;;  %v651_v44 = vld [vmem:[#allocation3 + $0x180] sm:$0xff]  ;;  %v653_v45 = vld [vmem:[#allocation3 + $0x190] sm:$0xff] }
 0x1c1   :  { %1375 = vmatprep.subr.bf16.mxu1 %v876_v46  ;;  %1539 = vmatprep.subr.bf16.mxu0 %v878_v47  ;;  %v955_v46 = vunpack.c.l.s8.bf16 %v651_v44  ;;  %v957_v47 = vunpack.c.l.s8.bf16 %v653_v45 }
 0x1c4   :  { %1376 = vmatpush1.bf16.msra.mxu1 %v875_v50  ;;  %1540 = vmatpush1.bf16.msra.mxu0 %v877_v51  ;;  %v963_v50 = vunpack.c.h.s8.bf16 %v651_v44  ;;  %v965_v51 = vunpack.c.h.s8.bf16 %v653_v45 }
 0x1c5   :  { %1377 = vmatprep.subr.bf16.mxu1 %v884_v52  ;;  %1541 = vmatprep.subr.bf16.mxu0 %v886_v53  ;;  %v660_v52 = vld [vmem:[#allocation3 + $0x1c8] sm:$0xff]  ;;  %v662_v53 = vld [vmem:[#allocation3 + $0x1d8] sm:$0xff] }
 0x1c6   :  { %v972_v54 = vunpack.c.l.s8.bf16 %v660_v52  ;;  %v974_v55 = vunpack.c.l.s8.bf16 %v662_v53  ;;  %v980_v60 = vunpack.c.h.s8.bf16 %v660_v52  ;;  %v982_v61 = vunpack.c.h.s8.bf16 %v662_v53 }
 0x1c8   :  { %1378 = vmatpush1.bf16.msra.mxu1 %v883_v56  ;;  %1542 = vmatpush1.bf16.msra.mxu0 %v885_v57  ;;  %v659_v56 = vld [vmem:[#allocation3 + $0x1c0] sm:$0xff]  ;;  %v661_v57 = vld [vmem:[#allocation3 + $0x1d0] sm:$0xff] }
 0x1c9   :  { %1379 = vmatprep.subr.bf16.mxu1 %v892_v58  ;;  %1543 = vmatprep.subr.bf16.mxu0 %v894_v59  ;;  %v971_v58 = vunpack.c.l.s8.bf16 %v659_v56  ;;  %v973_v59 = vunpack.c.l.s8.bf16 %v661_v57 }
 0x1cc   :  { %1380 = vmatpush1.bf16.msra.mxu1 %v891_v62  ;;  %1544 = vmatpush1.bf16.msra.mxu0 %v893_v63  ;;  %v979_v62 = vunpack.c.h.s8.bf16 %v659_v56  ;;  %v981_v63 = vunpack.c.h.s8.bf16 %v661_v57 }
 0x1cd   :  { %1381 = vmatprep.subr.bf16.mxu1 %v900_v0  ;;  %1545 = vmatprep.subr.bf16.mxu0 %v902_v1  ;;  %v668_v0 = vld [vmem:[#allocation3 + $0x208] sm:$0xff]  ;;  %v670_v1 = vld [vmem:[#allocation3 + $0x218] sm:$0xff] }
 0x1ce   :  { %v988_v2 = vunpack.c.l.s8.bf16 %v668_v0  ;;  %v990_v3 = vunpack.c.l.s8.bf16 %v670_v1  ;;  %v996_v33 = vunpack.c.h.s8.bf16 %v668_v0 }
 0x1d0   :  { %1382 = vmatpush1.bf16.msra.mxu1 %v899_v4  ;;  %1546 = vmatpush1.bf16.msra.mxu0 %v901_v5  ;;  %v215_v4 = vlaneseq }
 0x1d1   :  { %1383 = vmatprep.subr.bf16.mxu1 %v908_v6  ;;  %1547 = vmatprep.subr.bf16.mxu0 %v910_v7  ;;  %v3491_v7 = vld [vmem:[%s3870_s8] sm:$0xff] }
 0x1d2   :  { %v3483_v5 = vshrl.u32 %v215_v4, 7  ;;  %v692_v4 = vld [vmem:[#allocation3 + $0x2c8] sm:$0xff] }
 0x1d4   :  { %1384 = vmatpush1.bf16.msra.mxu1 %v907_v10  ;;  %1548 = vmatpush1.bf16.msra.mxu0 %v909_v11  ;;  %v3486_v6 = vsub.s32 0, %v3483_v5  ;;  %v3494_v8 = vsub.s32 1, %v3483_v5  ;;  %v3497_v9 = vsub.s32 3, %v3483_v5 }
 0x1d5   :  { %1385 = vmatprep.subr.bf16.mxu1 %v916_v12  ;;  %1549 = vmatprep.subr.bf16.mxu0 %v918_v13 }
 0x1d6   :  { %v218_v10 = vrot.slane %v3491_v7, %v3486_v6  ;;  %v222_v11 = vrot.slane %v3491_v7, %v3494_v8  ;;  %v230_v12 = vrot.slane %v3491_v7, %v3497_v9 }
 0x1d8   :  { %1386 = vmatpush1.bf16.msra.mxu1 %v915_v16  ;;  %1550 = vmatpush1.bf16.msra.mxu0 %v917_v17 }
 0x1d9   :  { %1387 = vmatprep.subr.bf16.mxu1 %v924_v18  ;;  %1551 = vmatprep.subr.bf16.mxu0 %v926_v19 }
 0x1dc   :  { %1388 = vmatpush1.bf16.msra.mxu1 %v923_v22  ;;  %1552 = vmatpush1.bf16.msra.mxu0 %v925_v23 }
 0x1dd   :  { %1389 = vmatprep.subr.bf16.mxu1 %v932_v24  ;;  %1553 = vmatprep.subr.bf16.mxu0 %v934_v25  ;;  %v667_v25 = vld [vmem:[#allocation3 + $0x200] sm:$0xff] }
 0x1de   :  { %v995_v38 = vunpack.c.h.s8.bf16 %v667_v25 }
 0x1e0   :  { %1390 = vmatpush1.bf16.msra.mxu1 %v931_v29  ;;  %1554 = vmatpush1.bf16.msra.mxu0 %v933_v30 }
 0x1e1   :  { %1391 = vmatprep.subr.bf16.mxu1 %v940_v31  ;;  %1555 = vmatprep.subr.bf16.mxu0 %v942_v32  ;;  %v987_v31 = vunpack.c.l.s8.bf16 %v667_v25  ;;  %v989_v32 = vunpack.c.l.s8.bf16 %v669_v26 }
 0x1e4   :  { %1392 = vmatpush1.bf16.msra.mxu1 %v939_v34  ;;  %1556 = vmatpush1.bf16.msra.mxu0 %v941_v35  ;;  %v998_v34 = vunpack.c.h.s8.bf16 %v670_v1  ;;  %v676_v35 = vld [vmem:[#allocation3 + $0x248] sm:$0xff] }
 0x1e5   :  { %1393 = vmatprep.subr.bf16.mxu1 %v948_v36  ;;  %1557 = vmatprep.subr.bf16.mxu0 %v950_v37  ;;  %v678_v36 = vld [vmem:[#allocation3 + $0x258] sm:$0xff] }
 0x1e8   :  { %1394 = vmatpush1.bf16.msra.mxu1 %v947_v40  ;;  %1558 = vmatpush1.bf16.msra.mxu0 %v949_v41  ;;  %v1004_v40 = vunpack.c.l.s8.bf16 %v676_v35  ;;  %v1006_v41 = vunpack.c.l.s8.bf16 %v678_v36 }
 0x1e9   :  { %1395 = vmatprep.subr.bf16.mxu1 %v956_v42  ;;  %1559 = vmatprep.subr.bf16.mxu0 %v958_v43  ;;  %v675_v42 = vld [vmem:[#allocation3 + $0x240] sm:$0xff]  ;;  %v677_v43 = vld [vmem:[#allocation3 + $0x250] sm:$0xff] }
 0x1ea   :  { %v1003_v44 = vunpack.c.l.s8.bf16 %v675_v42  ;;  %v1005_v45 = vunpack.c.l.s8.bf16 %v677_v43  ;;  %v1011_v56 = vunpack.c.h.s8.bf16 %v675_v42  ;;  %v1013_v57 = vunpack.c.h.s8.bf16 %v677_v43  ;;  %v707_v43 = vld [vmem:[#allocation3 + $0x340] sm:$0xff] }
 0x1ec   :  { %1396 = vmatpush1.bf16.msra.mxu1 %v955_v46  ;;  %1560 = vmatpush1.bf16.msra.mxu0 %v957_v47  ;;  %v1012_v46 = vunpack.c.h.s8.bf16 %v676_v35  ;;  %v1014_v47 = vunpack.c.h.s8.bf16 %v678_v36  ;;  %v708_v36 = vld [vmem:[#allocation3 + $0x348] sm:$0xff] }
 0x1ed   :  { %1397 = vmatprep.subr.bf16.mxu1 %v964_v48  ;;  %1561 = vmatprep.subr.bf16.mxu0 %v966_v49 }
 0x1f0   :  { %1398 = vmatpush1.bf16.msra.mxu1 %v963_v50  ;;  %1562 = vmatpush1.bf16.msra.mxu0 %v965_v51  ;;  %v684_v50 = vld [vmem:[#allocation3 + $0x288] sm:$0xff]  ;;  %v686_v51 = vld [vmem:[#allocation3 + $0x298] sm:$0xff] }
 0x1f1   :  { %1399 = vmatprep.subr.bf16.mxu1 %v972_v54  ;;  %1563 = vmatprep.subr.bf16.mxu0 %v974_v55 }
 0x1f4   :  { %1400 = vmatpush1.bf16.msra.mxu1 %v971_v58  ;;  %1564 = vmatpush1.bf16.msra.mxu0 %v973_v59 }
 0x1f5   :  { %1401 = vmatprep.subr.bf16.mxu1 %v980_v60  ;;  %1565 = vmatprep.subr.bf16.mxu0 %v982_v61  ;;  %v1020_v60 = vunpack.c.l.s8.bf16 %v684_v50  ;;  %v1022_v61 = vunpack.c.l.s8.bf16 %v686_v51 }
 0x1f8   :  { %1402 = vmatpush1.bf16.msra.mxu1 %v979_v62  ;;  %1566 = vmatpush1.bf16.msra.mxu0 %v981_v63  ;;  %v683_v62 = vld [vmem:[#allocation3 + $0x280] sm:$0xff]  ;;  %v685_v63 = vld [vmem:[#allocation3 + $0x290] sm:$0xff] }
 0x1f9   :  { %1412 = vmatprep.subr.bf16.mxu1 %v988_v2  ;;  %1576 = vmatprep.subr.bf16.mxu0 %v990_v3  ;;  %v1019_v0 = vunpack.c.l.s8.bf16 %v683_v62  ;;  %v1021_v1 = vunpack.c.l.s8.bf16 %v685_v63  ;;  %v1028_v2 = vunpack.c.h.s8.bf16 %v684_v50  ;;  %v1030_v3 = vunpack.c.h.s8.bf16 %v686_v51  ;;  %v716_v51 = vld [vmem:[#allocation3 + $0x388] sm:$0xff] }
 0x27e   :  { %v457_v13 = vpop.f32.mrb[0].mxu1  ;;  %v3505_v14 = vpop.f32.mrb[4].mxu0 }
 0x27f   :  { %v458_v15 = vadd.f32 %v457_v13, %v218_v10  ;;  %v459_v16 = vpop.f32.mrb[1].mxu1  ;;  %v500_v17 = vpop.f32.mrb[5].mxu0  ;;  %v694_v10 = vld [vmem:[#allocation3 + $0x2d8] sm:$0xff]  ;;  %v1036_v13 = vunpack.c.l.s8.bf16 %v692_v4 }
 0x280   :  { %v460_v18 = vadd.f32 %v459_v16, %v222_v11  ;;  %v501_v19 = vadd.f32 %v500_v17, %v230_v12  ;;  %v461_v20 = vpop.f32.mrb[2].mxu1  ;;  %v502_v21 = vpop.f32.mrb[6].mxu0  ;;  %v1027_v11 = vunpack.c.h.s8.bf16 %v683_v62  ;;  %v1029_v12 = vunpack.c.h.s8.bf16 %v685_v63  ;;  %v691_v16 = vld [vmem:[#allocation3 + $0x2c0] sm:$0xff]  ;;  %v693_v17 = vld [vmem:[#allocation3 + $0x2d0] sm:$0xff] }
 0x281   :  { %v587_v22 = vmax.f32 %v458_v15, 0.0  ;;  %v462_v23 = vpop.f32.mrb[3].mxu1  ;;  %v503_v24 = vpop.f32.mrb[7].mxu0  ;;  %v1038_v15 = vunpack.c.l.s8.bf16 %v694_v10  ;;  %v1044_v20 = vunpack.c.h.s8.bf16 %v692_v4  ;;  %v1046_v21 = vunpack.c.h.s8.bf16 %v694_v10  ;;  %v726_v4 = vld [vmem:[#allocation3 + $0x3d8] sm:$0xff] }
 0x282   :  { %v588_v27 = vmax.f32 %v460_v18, 0.0  ;;  %v590_v29 = vmax.f32 %v501_v19, 0.0  ;;  %v1035_v18 = vunpack.c.l.s8.bf16 %v691_v16  ;;  %v1037_v19 = vunpack.c.l.s8.bf16 %v693_v17  ;;  %v702_v23 = vld [vmem:[#allocation3 + $0x318] sm:$0xff] }
 0x283   :  { %v3509_v28 = vpack.c.bf16 %v587_v22, %v587_v22  ;;  %v700_v22 = vld [vmem:[#allocation3 + $0x308] sm:$0xff]  ;;  %v1043_v24 = vunpack.c.h.s8.bf16 %v691_v16  ;;  %v1045_v25 = vunpack.c.h.s8.bf16 %v693_v17  ;;  %v1062_v35 = vunpack.c.h.s8.bf16 %v702_v23  ;;  %v723_v16 = vld [vmem:[#allocation3 + $0x3c0] sm:$0xff]  ;;  %v725_v17 = vld [vmem:[#allocation3 + $0x3d0] sm:$0xff] }
 0x284   :  { %v3507_v30 = vpack.c.bf16 %v588_v27, %v588_v27  ;;  %v3513_v37 = vpack.c.bf16 %v590_v29, %v590_v29  ;;  %v1052_v26 = vunpack.c.l.s8.bf16 %v700_v22  ;;  %v1054_v27 = vunpack.c.l.s8.bf16 %v702_v23  ;;  %v699_v29 = vld [vmem:[#allocation3 + $0x300] sm:$0xff] }
 0x285   :  { %v3528_v63 = vsub.s32 2, %v3483_v5  ;;  %v1110_v23 = vunpack.c.h.s8.bf16 %v726_v4 }
 0x286   :  { %1403 = vmatprep.mubr.bf16.mxu1 %v3507_v30  ;;  %1567 = vmatprep.mubr.bf16.mxu0 %v3507_v30 }
 0x287   :  { %1404 = vmatmul.mubr.bf16.vlgmr.msra.gmra.mrb[8].mxu1 %v3509_v28  ;;  %1568 = vmatmul.mubr.bf16.vlgmr.msra.gmra.mrb[12].mxu0 %v3509_v28 }
 0x288   :  { %1413 = vmatpush1.bf16.msra.mxu1 %v987_v31  ;;  %1577 = vmatpush1.bf16.msra.mxu0 %v989_v32  ;;  %v701_v31 = vld [vmem:[#allocation3 + $0x310] sm:$0xff]  ;;  %v1051_v32 = vunpack.c.l.s8.bf16 %v699_v29 }
 0x289   :  { %1444 = vmatprep.mubr.bf16.mxu1 %v3513_v37  ;;  %1608 = vmatprep.mubr.bf16.mxu0 %v3513_v37 }
 0x28a   :  { %1414 = vmatprep.subr.bf16.mxu1 %v996_v33  ;;  %1578 = vmatprep.subr.bf16.mxu0 %v998_v34  ;;  %v1053_v33 = vunpack.c.l.s8.bf16 %v701_v31  ;;  %v1060_v34 = vunpack.c.h.s8.bf16 %v700_v22 }
 0x28c   :  { %1415 = vmatpush1.bf16.msra.mxu1 %v995_v38  ;;  %1579 = vmatpush1.bf16.msra.mxu0 %v997_v39  ;;  %v710_v38 = vld [vmem:[#allocation3 + $0x358] sm:$0xff]  ;;  %v1059_v39 = vunpack.c.h.s8.bf16 %v699_v29  ;;  %v1109_v29 = vunpack.c.h.s8.bf16 %v725_v17 }
 0x28d   :  { %1416 = vmatprep.subr.bf16.mxu1 %v1004_v40  ;;  %1580 = vmatprep.subr.bf16.mxu0 %v1006_v41  ;;  %v1061_v40 = vunpack.c.h.s8.bf16 %v701_v31  ;;  %v1068_v41 = vunpack.c.l.s8.bf16 %v708_v36  ;;  %v1070_v42 = vunpack.c.l.s8.bf16 %v710_v38  ;;  %v1078_v50 = vunpack.c.h.s8.bf16 %v710_v38 }
 0x28e   :  { %v3519_v48 = vpop.f32.mrb[4].mxu1  ;;  %v3521_v49 = vpop.f32.mrb[8].mxu0 }
 0x28f   :  { %v3523_v52 = vpop.f32.mrb[5].mxu1  ;;  %v3525_v53 = vpop.f32.mrb[9].mxu0 }
 0x290   :  { %v543_v54 = vpop.f32.mrb[6].mxu1  ;;  %v584_v55 = vpop.f32.mrb[10].mxu0  ;;  %1417 = vmatpush1.bf16.msra.mxu1 %v1003_v44  ;;  %1581 = vmatpush1.bf16.msra.mxu0 %v1005_v45  ;;  %v709_v44 = vld [vmem:[#allocation3 + $0x350] sm:$0xff]  ;;  %v1067_v45 = vunpack.c.l.s8.bf16 %v707_v43 }
 0x291   :  { %v544_v58 = vpop.f32.mrb[7].mxu1  ;;  %v585_v59 = vpop.f32.mrb[11].mxu0  ;;  %1418 = vmatprep.subr.bf16.mxu1 %v1012_v46  ;;  %1582 = vmatprep.subr.bf16.mxu0 %v1014_v47  ;;  %v1069_v46 = vunpack.c.l.s8.bf16 %v709_v44  ;;  %v1076_v47 = vunpack.c.h.s8.bf16 %v708_v36  ;;  %v718_v54 = vld [vmem:[#allocation3 + $0x398] sm:$0xff]  ;;  %v1075_v55 = vunpack.c.h.s8.bf16 %v707_v43 }
 0x292   :  { %v1086_v58 = vunpack.c.l.s8.bf16 %v718_v54  ;;  %v715_v59 = vld [vmem:[#allocation3 + $0x380] sm:$0xff]  ;;  %v742_v43 = vld [vmem:[#allocation3 + $0x458] sm:$0xff] }
 0x293   :  { %v1091_v10 = vunpack.c.h.s8.bf16 %v715_v59 }
 0x294   :  { %1419 = vmatpush1.bf16.msra.mxu1 %v1011_v56  ;;  %1583 = vmatpush1.bf16.msra.mxu0 %v1013_v57  ;;  %v1077_v56 = vunpack.c.h.s8.bf16 %v709_v44  ;;  %v1084_v57 = vunpack.c.l.s8.bf16 %v716_v51 }
 0x295   :  { %1420 = vmatprep.subr.bf16.mxu1 %v1020_v60  ;;  %1584 = vmatprep.subr.bf16.mxu0 %v1022_v61  ;;  %v717_v60 = vld [vmem:[#allocation3 + $0x390] sm:$0xff]  ;;  %v1083_v61 = vunpack.c.l.s8.bf16 %v715_v59  ;;  %v750_v59 = vld [vmem:[#allocation3 + $0x498] sm:$0xff] }
 0x296   :  { %v1085_v62 = vunpack.c.l.s8.bf16 %v717_v60 }
 0x298   :  { %1421 = vmatpush1.bf16.msra.mxu1 %v1019_v0  ;;  %1585 = vmatpush1.bf16.msra.mxu0 %v1021_v1  ;;  %v1092_v0 = vunpack.c.h.s8.bf16 %v716_v51  ;;  %v1094_v1 = vunpack.c.h.s8.bf16 %v718_v54  ;;  %v741_v51 = vld [vmem:[#allocation3 + $0x450] sm:$0xff] }
 0x299   :  { %1422 = vmatprep.subr.bf16.mxu1 %v1028_v2  ;;  %1586 = vmatprep.subr.bf16.mxu0 %v1030_v3  ;;  %v3531_v2 = vsub.s32 5, %v3483_v5  ;;  %v724_v3 = vld [vmem:[#allocation3 + $0x3c8] sm:$0xff] }
 0x29a   :  { %v1108_v22 = vunpack.c.h.s8.bf16 %v724_v3 }
 0x29c   :  { %1423 = vmatpush1.bf16.msra.mxu1 %v1027_v11  ;;  %1587 = vmatpush1.bf16.msra.mxu0 %v1029_v12  ;;  %v1093_v11 = vunpack.c.h.s8.bf16 %v717_v60  ;;  %v226_v12 = vrot.slane %v3491_v7, %v3528_v63 }
 0x29d   :  { %1424 = vmatprep.subr.bf16.mxu1 %v1036_v13  ;;  %1588 = vmatprep.subr.bf16.mxu0 %v1038_v15  ;;  %v1100_v13 = vunpack.c.l.s8.bf16 %v724_v3  ;;  %v1102_v15 = vunpack.c.l.s8.bf16 %v726_v4  ;;  %v749_v3 = vld [vmem:[#allocation3 + $0x490] sm:$0xff] }
 0x2a0   :  { %1425 = vmatpush1.bf16.msra.mxu1 %v1035_v18  ;;  %1589 = vmatpush1.bf16.msra.mxu0 %v1037_v19  ;;  %v238_v18 = vrot.slane %v3491_v7, %v3531_v2  ;;  %v1099_v19 = vunpack.c.l.s8.bf16 %v723_v16 }
 0x2a1   :  { %1426 = vmatprep.subr.bf16.mxu1 %v1044_v20  ;;  %1590 = vmatprep.subr.bf16.mxu0 %v1046_v21  ;;  %v1101_v20 = vunpack.c.l.s8.bf16 %v725_v17  ;;  %v499_v21 = vadd.f32 %v3505_v14, %v226_v12  ;;  %v733_v14 = vld [vmem:[#allocation3 + $0x410] sm:$0xff]  ;;  %v1158_v12 = vunpack.c.h.s8.bf16 %v750_v59  ;;  %v1157_v17 = vunpack.c.h.s8.bf16 %v749_v3 }
 0x2a3   :  { %v589_v31 = vmax.f32 %v499_v21, 0.0  ;;  %v757_v21 = vld [vmem:[#allocation3 + $0x4d0] sm:$0xff] }
 0x2a4   :  { %1427 = vmatpush1.bf16.msra.mxu1 %v1043_v24  ;;  %1591 = vmatpush1.bf16.msra.mxu0 %v1045_v25  ;;  %v542_v24 = vadd.f32 %v3523_v52, %v238_v18  ;;  %v732_v25 = vld [vmem:[#allocation3 + $0x408] sm:$0xff]  ;;  %v1117_v52 = vunpack.c.l.s8.bf16 %v733_v14 }
 0x2a5   :  { %1428 = vmatprep.subr.bf16.mxu1 %v1052_v26  ;;  %1592 = vmatprep.subr.bf16.mxu0 %v1054_v27  ;;  %v734_v26 = vld [vmem:[#allocation3 + $0x418] sm:$0xff]  ;;  %v1107_v27 = vunpack.c.h.s8.bf16 %v723_v16  ;;  %v3539_v38 = vpack.c.bf16 %v589_v31, %v589_v31  ;;  %v1173_v31 = vunpack.c.h.s8.bf16 %v757_v21 }
 0x2a8   :  { %1429 = vmatpush1.bf16.msra.mxu1 %v1051_v32  ;;  %1593 = vmatpush1.bf16.msra.mxu0 %v1053_v33  ;;  %v1116_v32 = vunpack.c.l.s8.bf16 %v732_v25  ;;  %v1118_v33 = vunpack.c.l.s8.bf16 %v734_v26 }
 0x2a9   :  { %1430 = vmatprep.subr.bf16.mxu1 %v1060_v34  ;;  %1594 = vmatprep.subr.bf16.mxu0 %v1062_v35  ;;  %v731_v34 = vld [vmem:[#allocation3 + $0x400] sm:$0xff]  ;;  %v592_v35 = vmax.f32 %v542_v24, 0.0 }
 0x2aa   :  { %v1115_v36 = vunpack.c.l.s8.bf16 %v731_v34  ;;  %v1123_v44 = vunpack.c.h.s8.bf16 %v731_v34 }
 0x2ac   :  { %1431 = vmatpush1.bf16.msra.mxu1 %v1059_v39  ;;  %1595 = vmatpush1.bf16.msra.mxu0 %v1061_v40  ;;  %v3541_v39 = vpack.c.bf16 %v592_v35, %v592_v35  ;;  %v1124_v40 = vunpack.c.h.s8.bf16 %v732_v25  ;;  %v765_v35 = vld [vmem:[#allocation3 + $0x510] sm:$0xff] }
 0x2ad   :  { %1432 = vmatprep.subr.bf16.mxu1 %v1068_v41  ;;  %1596 = vmatprep.subr.bf16.mxu0 %v1070_v42  ;;  %v1126_v41 = vunpack.c.h.s8.bf16 %v734_v26  ;;  %v740_v42 = vld [vmem:[#allocation3 + $0x448] sm:$0xff] }
 0x2ae   :  { %v764_v26 = vld [vmem:[#allocation3 + $0x508] sm:$0xff] }
 0x2b0   :  { %1433 = vmatpush1.bf16.msra.mxu1 %v1067_v45  ;;  %1597 = vmatpush1.bf16.msra.mxu0 %v1069_v46  ;;  %v1125_v45 = vunpack.c.h.s8.bf16 %v733_v14  ;;  %v1132_v46 = vunpack.c.l.s8.bf16 %v740_v42 }
 0x2b1   :  { %1434 = vmatprep.subr.bf16.mxu1 %v1076_v47  ;;  %1598 = vmatprep.subr.bf16.mxu0 %v1078_v50  ;;  %v739_v47 = vld [vmem:[#allocation3 + $0x440] sm:$0xff]  ;;  %v1134_v50 = vunpack.c.l.s8.bf16 %v742_v43 }
 0x2b2   :  { %v1131_v54 = vunpack.c.l.s8.bf16 %v739_v47  ;;  %v1139_v60 = vunpack.c.h.s8.bf16 %v739_v47 }
 0x2b4   :  { %1435 = vmatpush1.bf16.msra.mxu1 %v1075_v55  ;;  %1599 = vmatpush1.bf16.msra.mxu0 %v1077_v56  ;;  %v1133_v55 = vunpack.c.l.s8.bf16 %v741_v51  ;;  %v1140_v56 = vunpack.c.h.s8.bf16 %v740_v42  ;;  %v774_v42 = vld [vmem:[#allocation3 + $0x558] sm:$0xff] }
 0x2b5   :  { %1436 = vmatprep.subr.bf16.mxu1 %v1084_v57  ;;  %1600 = vmatprep.subr.bf16.mxu0 %v1086_v58  ;;  %v1142_v57 = vunpack.c.h.s8.bf16 %v742_v43  ;;  %v748_v58 = vld [vmem:[#allocation3 + $0x488] sm:$0xff]  ;;  %v1198_v47 = vunpack.c.l.s8.bf16 %v774_v42 }
 0x2b8   :  { %1437 = vmatpush1.bf16.msra.mxu1 %v1083_v61  ;;  %1601 = vmatpush1.bf16.msra.mxu0 %v1085_v62  ;;  %v1141_v61 = vunpack.c.h.s8.bf16 %v741_v51  ;;  %v1148_v62 = vunpack.c.l.s8.bf16 %v748_v58 }
 0x2b9   :  { %1438 = vmatprep.subr.bf16.mxu1 %v1092_v0  ;;  %1602 = vmatprep.subr.bf16.mxu0 %v1094_v1  ;;  %v747_v0 = vld [vmem:[#allocation3 + $0x480] sm:$0xff]  ;;  %v1150_v1 = vunpack.c.l.s8.bf16 %v750_v59 }
 0x2ba   :  { %v1147_v4 = vunpack.c.l.s8.bf16 %v747_v0  ;;  %v1155_v16 = vunpack.c.h.s8.bf16 %v747_v0 }
 0x2bc   :  { %1439 = vmatpush1.bf16.msra.mxu1 %v1091_v10  ;;  %1603 = vmatpush1.bf16.msra.mxu0 %v1093_v11  ;;  %v1149_v10 = vunpack.c.l.s8.bf16 %v749_v3  ;;  %v1156_v11 = vunpack.c.h.s8.bf16 %v748_v58  ;;  %v782_v58 = vld [vmem:[#allocation3 + $0x598] sm:$0xff] }
 0x2bd   :  { %1440 = vmatprep.subr.bf16.mxu1 %v1100_v13  ;;  %1604 = vmatprep.subr.bf16.mxu0 %v1102_v15  ;;  %v756_v13 = vld [vmem:[#allocation3 + $0x4c8] sm:$0xff]  ;;  %v758_v15 = vld [vmem:[#allocation3 + $0x4d8] sm:$0xff]  ;;  %v1214_v0 = vunpack.c.l.s8.bf16 %v782_v58 }
 0x2be   :  { %v1164_v18 = vunpack.c.l.s8.bf16 %v756_v13  ;;  %v1172_v24 = vunpack.c.h.s8.bf16 %v756_v13  ;;  %v1174_v25 = vunpack.c.h.s8.bf16 %v758_v15  ;;  %v788_v13 = vld [vmem:[#allocation3 + $0x5c8] sm:$0xff] }
 0x2c0   :  { %1441 = vmatpush1.bf16.msra.mxu1 %v1099_v19  ;;  %1605 = vmatpush1.bf16.msra.mxu0 %v1101_v20  ;;  %v755_v19 = vld [vmem:[#allocation3 + $0x4c0] sm:$0xff]  ;;  %v1166_v20 = vunpack.c.l.s8.bf16 %v758_v15  ;;  %v3551_v15 = vsub.s32 7, %v3483_v5 }
 0x2c1   :  { %1442 = vmatprep.subr.bf16.mxu1 %v1108_v22  ;;  %1606 = vmatprep.subr.bf16.mxu0 %v1110_v23  ;;  %v1163_v22 = vunpack.c.l.s8.bf16 %v755_v19  ;;  %v1165_v23 = vunpack.c.l.s8.bf16 %v757_v21  ;;  %v787_v21 = vld [vmem:[#allocation3 + $0x5c0] sm:$0xff] }
 0x2c4   :  { %1443 = vmatpush1.bf16.msra.mxu1 %v1107_v27  ;;  %1607 = vmatpush1.bf16.msra.mxu0 %v1109_v29  ;;  %v766_v27 = vld [vmem:[#allocation3 + $0x518] sm:$0xff]  ;;  %v1171_v29 = vunpack.c.h.s8.bf16 %v755_v19 }
 0x2c5   :  { %1453 = vmatprep.subr.bf16.mxu1 %v1116_v32  ;;  %1617 = vmatprep.subr.bf16.mxu0 %v1118_v33  ;;  %v1180_v32 = vunpack.c.l.s8.bf16 %v764_v26  ;;  %v763_v33 = vld [vmem:[#allocation3 + $0x500] sm:$0xff]  ;;  %v1182_v34 = vunpack.c.l.s8.bf16 %v766_v27 }
 0x2c6   :  { %v1179_v14 = vunpack.c.l.s8.bf16 %v763_v33  ;;  %v1187_v43 = vunpack.c.h.s8.bf16 %v763_v33 }
 0x2c7   :  { %1445 = vmatmul.mubr.bf16.vlgmr.msra.gmra.mrb[8].mxu1 %v3539_v38  ;;  %1609 = vmatmul.mubr.bf16.vlgmr.msra.gmra.mrb[12].mxu0 %v3539_v38 }
 0x2c8   :  { %1454 = vmatpush1.bf16.msra.mxu1 %v1115_v36  ;;  %1485 = vmatprep.mubr.bf16.mxu1 %v3541_v39  ;;  %v1181_v36 = vunpack.c.l.s8.bf16 %v765_v35 }
 0x2c9   :  { %1618 = vmatpush1.bf16.msra.mxu0 %v1117_v52  ;;  %1649 = vmatprep.mubr.bf16.mxu0 %v3541_v39  ;;  %v1188_v52 = vunpack.c.h.s8.bf16 %v764_v26 }
 0x2ca   :  { %1455 = vmatprep.subr.bf16.mxu1 %v1124_v40  ;;  %1619 = vmatprep.subr.bf16.mxu0 %v1126_v41  ;;  %v1190_v40 = vunpack.c.h.s8.bf16 %v766_v27  ;;  %v772_v41 = vld [vmem:[#allocation3 + $0x548] sm:$0xff] }
 0x2cc   :  { %1456 = vmatpush1.bf16.msra.mxu1 %v1123_v44  ;;  %v1189_v44 = vunpack.c.h.s8.bf16 %v765_v35  ;;  %v1235_v35 = vunpack.c.h.s8.bf16 %v787_v21 }
 0x2cd   :  { %1620 = vmatpush1.bf16.msra.mxu0 %v1125_v45  ;;  %1457 = vmatprep.subr.bf16.mxu1 %v1132_v46  ;;  %v1196_v45 = vunpack.c.l.s8.bf16 %v772_v41  ;;  %v771_v46 = vld [vmem:[#allocation3 + $0x540] sm:$0xff] }
 0x2ce   :  { %1621 = vmatprep.subr.bf16.mxu0 %v1134_v50  ;;  %v773_v50 = vld [vmem:[#allocation3 + $0x550] sm:$0xff]  ;;  %v1195_v51 = vunpack.c.l.s8.bf16 %v771_v46  ;;  %v1203_v59 = vunpack.c.h.s8.bf16 %v771_v46 }
 0x2d0   :  { %1458 = vmatpush1.bf16.msra.mxu1 %v1131_v54  ;;  %v1197_v54 = vunpack.c.l.s8.bf16 %v773_v50 }
 0x2d1   :  { %1622 = vmatpush1.bf16.msra.mxu0 %v1133_v55  ;;  %1459 = vmatprep.subr.bf16.mxu1 %v1140_v56  ;;  %v1204_v55 = vunpack.c.h.s8.bf16 %v772_v41  ;;  %v1206_v56 = vunpack.c.h.s8.bf16 %v774_v42 }
 0x2d2   :  { %1623 = vmatprep.subr.bf16.mxu0 %v1142_v57  ;;  %v780_v57 = vld [vmem:[#allocation3 + $0x588] sm:$0xff] }
 0x2d4   :  { %1460 = vmatpush1.bf16.msra.mxu1 %v1139_v60  ;;  %v1205_v60 = vunpack.c.h.s8.bf16 %v773_v50  ;;  %v806_v50 = vld [vmem:[#allocation3 + $0x658] sm:$0xff] }
 0x2d5   :  { %1624 = vmatpush1.bf16.msra.mxu0 %v1141_v61  ;;  %1461 = vmatprep.subr.bf16.mxu1 %v1148_v62  ;;  %v1212_v61 = vunpack.c.l.s8.bf16 %v780_v57  ;;  %v779_v62 = vld [vmem:[#allocation3 + $0x580] sm:$0xff] }
 0x2d6   :  { %1625 = vmatprep.subr.bf16.mxu0 %v1150_v1  ;;  %v781_v1 = vld [vmem:[#allocation3 + $0x590] sm:$0xff]  ;;  %v1211_v3 = vunpack.c.l.s8.bf16 %v779_v62 }
 0x2d7   :  { %v1221_v19 = vunpack.c.h.s8.bf16 %v781_v1 }
 0x2d8   :  { %1462 = vmatpush1.bf16.msra.mxu1 %v1147_v4  ;;  %v3548_v4 = vsub.s32 4, %v3483_v5 }
 0x2d9   :  { %1626 = vmatpush1.bf16.msra.mxu0 %v1149_v10  ;;  %1463 = vmatprep.subr.bf16.mxu1 %v1156_v11  ;;  %v1213_v10 = vunpack.c.l.s8.bf16 %v781_v1  ;;  %v1220_v11 = vunpack.c.h.s8.bf16 %v780_v57  ;;  %v1262_v57 = vunpack.c.l.s8.bf16 %v806_v50  ;;  %v814_v1 = vld [vmem:[#allocation3 + $0x698] sm:$0xff] }
 0x2da   :  { %1627 = vmatprep.subr.bf16.mxu0 %v1158_v12  ;;  %v1222_v12 = vunpack.c.h.s8.bf16 %v782_v58  ;;  %v805_v58 = vld [vmem:[#allocation3 + $0x650] sm:$0xff] }
 0x2dc   :  { %1464 = vmatpush1.bf16.msra.mxu1 %v1155_v16  ;;  %v790_v16 = vld [vmem:[#allocation3 + $0x5d8] sm:$0xff] }
 0x2dd   :  { %1628 = vmatpush1.bf16.msra.mxu0 %v1157_v17  ;;  %1465 = vmatprep.subr.bf16.mxu1 %v1164_v18  ;;  %v1219_v17 = vunpack.c.h.s8.bf16 %v779_v62  ;;  %v234_v18 = vrot.slane %v3491_v7, %v3548_v4  ;;  %v1270_v62 = vunpack.c.h.s8.bf16 %v806_v50  ;;  %v838_v50 = vld [vmem:[#allocation3 + $0x758] sm:$0xff] }
 0x2de   :  { %1629 = vmatprep.subr.bf16.mxu0 %v1166_v20  ;;  %v1228_v20 = vunpack.c.l.s8.bf16 %v788_v13 }
 0x2df   :  { %v540_v26 = vadd.f32 %v3519_v48, %v234_v18 }
 0x2e0   :  { %1466 = vmatpush1.bf16.msra.mxu1 %v1163_v22  ;;  %v1230_v22 = vunpack.c.l.s8.bf16 %v790_v16 }
 0x2e1   :  { %1630 = vmatpush1.bf16.msra.mxu0 %v1165_v23  ;;  %1467 = vmatprep.subr.bf16.mxu1 %v1172_v24  ;;  %v789_v23 = vld [vmem:[#allocation3 + $0x5d0] sm:$0xff]  ;;  %v246_v24 = vrot.slane %v3491_v7, %v3551_v15 }
 0x2e2   :  { %1631 = vmatprep.subr.bf16.mxu0 %v1174_v25  ;;  %v1227_v25 = vunpack.c.l.s8.bf16 %v787_v21  ;;  %v1229_v27 = vunpack.c.l.s8.bf16 %v789_v23  ;;  %v1237_v7 = vunpack.c.h.s8.bf16 %v789_v23  ;;  %v820_v21 = vld [vmem:[#allocation3 + $0x6c8] sm:$0xff] }
 0x2e3   :  { %v583_v33 = vadd.f32 %v3525_v53, %v246_v24 }
 0x2e4   :  { %1468 = vmatpush1.bf16.msra.mxu1 %v1171_v29  ;;  %v1236_v29 = vunpack.c.h.s8.bf16 %v788_v13  ;;  %v1278_v13 = vunpack.c.l.s8.bf16 %v814_v1 }
 0x2e5   :  { %1632 = vmatpush1.bf16.msra.mxu0 %v1173_v31  ;;  %1469 = vmatprep.subr.bf16.mxu1 %v1180_v32  ;;  %v1238_v31 = vunpack.c.h.s8.bf16 %v790_v16  ;;  %v796_v32 = vld [vmem:[#allocation3 + $0x608] sm:$0xff]  ;;  %v594_v41 = vmax.f32 %v583_v33, 0.0  ;;  %v813_v16 = vld [vmem:[#allocation3 + $0x690] sm:$0xff]  ;;  %v1300_v33 = vunpack.c.h.s8.bf16 %v820_v21 }
 0x2e6   :  { %1633 = vmatprep.subr.bf16.mxu0 %v1182_v34  ;;  %v798_v34 = vld [vmem:[#allocation3 + $0x618] sm:$0xff]  ;;  %v1277_v18 = vunpack.c.l.s8.bf16 %v813_v16  ;;  %v1285_v24 = vunpack.c.h.s8.bf16 %v813_v16  ;;  %v845_v16 = vld [vmem:[#allocation3 + $0x790] sm:$0xff] }
 0x2e7   :  { %v1246_v48 = vunpack.c.l.s8.bf16 %v798_v34  ;;  %v3561_v46 = vpack.c.bf16 %v594_v41, %v594_v41  ;;  %v829_v41 = vld [vmem:[#allocation3 + $0x710] sm:$0xff] }
 0x2e8   :  { %1470 = vmatpush1.bf16.msra.mxu1 %v1179_v14  ;;  %v591_v14 = vmax.f32 %v540_v26, 0.0  ;;  %v819_v26 = vld [vmem:[#allocation3 + $0x6c0] sm:$0xff] }
 0x2e9   :  { %1634 = vmatpush1.bf16.msra.mxu0 %v1181_v36  ;;  %1471 = vmatprep.subr.bf16.mxu1 %v1188_v52  ;;  %v1244_v36 = vunpack.c.l.s8.bf16 %v796_v32  ;;  %v795_v52 = vld [vmem:[#allocation3 + $0x600] sm:$0xff] }
 0x2ea   :  { %1635 = vmatprep.subr.bf16.mxu0 %v1190_v40  ;;  %v797_v40 = vld [vmem:[#allocation3 + $0x610] sm:$0xff]  ;;  %v1243_v42 = vunpack.c.l.s8.bf16 %v795_v52 }
 0x2eb   :  { %v1245_v53 = vunpack.c.l.s8.bf16 %v797_v40 }
 0x2ec   :  { %1472 = vmatpush1.bf16.msra.mxu1 %v1187_v43  ;;  %v3559_v43 = vpack.c.bf16 %v591_v14, %v591_v14  ;;  %v830_v14 = vld [vmem:[#allocation3 + $0x718] sm:$0xff] }
 0x2ed   :  { %1636 = vmatpush1.bf16.msra.mxu0 %v1189_v44  ;;  %1473 = vmatprep.subr.bf16.mxu1 %v1196_v45  ;;  %v1252_v44 = vunpack.c.h.s8.bf16 %v796_v32  ;;  %v804_v45 = vld [vmem:[#allocation3 + $0x648] sm:$0xff] }
 0x2ee   :  { %1637 = vmatprep.subr.bf16.mxu0 %v1198_v47  ;;  %v1254_v47 = vunpack.c.h.s8.bf16 %v798_v34 }
 0x2f0   :  { %1474 = vmatpush1.bf16.msra.mxu1 %v1195_v51  ;;  %v1251_v51 = vunpack.c.h.s8.bf16 %v795_v52 }
 0x2f1   :  { %1638 = vmatpush1.bf16.msra.mxu0 %v1197_v54  ;;  %1475 = vmatprep.subr.bf16.mxu1 %v1204_v55  ;;  %v1253_v54 = vunpack.c.h.s8.bf16 %v797_v40  ;;  %v1260_v55 = vunpack.c.l.s8.bf16 %v804_v45  ;;  %v1310_v40 = vunpack.c.l.s8.bf16 %v830_v14 }
 0x2f2   :  { %1639 = vmatprep.subr.bf16.mxu0 %v1206_v56  ;;  %v803_v56 = vld [vmem:[#allocation3 + $0x640] sm:$0xff] }
 0x2f4   :  { %1476 = vmatpush1.bf16.msra.mxu1 %v1203_v59  ;;  %v1259_v59 = vunpack.c.l.s8.bf16 %v803_v56 }
 0x2f5   :  { %1640 = vmatpush1.bf16.msra.mxu0 %v1205_v60  ;;  %1477 = vmatprep.subr.bf16.mxu1 %v1212_v61  ;;  %v1261_v60 = vunpack.c.l.s8.bf16 %v805_v58  ;;  %v1268_v61 = vunpack.c.h.s8.bf16 %v804_v45  ;;  %v1318_v45 = vunpack.c.h.s8.bf16 %v830_v14 }
 0x2f6   :  { %1641 = vmatprep.subr.bf16.mxu0 %v1214_v0  ;;  %v812_v0 = vld [vmem:[#allocation3 + $0x688] sm:$0xff] }
 0x2f8   :  { %1478 = vmatpush1.bf16.msra.mxu1 %v1211_v3  ;;  %v1267_v3 = vunpack.c.h.s8.bf16 %v803_v56  ;;  %v835_v56 = vld [vmem:[#allocation3 + $0x740] sm:$0xff] }
 0x2f9   :  { %1642 = vmatpush1.bf16.msra.mxu0 %v1213_v10  ;;  %1479 = vmatprep.subr.bf16.mxu1 %v1220_v11  ;;  %v1269_v10 = vunpack.c.h.s8.bf16 %v805_v58  ;;  %v1276_v11 = vunpack.c.l.s8.bf16 %v812_v0  ;;  %v837_v58 = vld [vmem:[#allocation3 + $0x750] sm:$0xff] }
 0x2fa   :  { %1643 = vmatprep.subr.bf16.mxu0 %v1222_v12  ;;  %v811_v12 = vld [vmem:[#allocation3 + $0x680] sm:$0xff] }
 0x2fb   :  { %v1283_v23 = vunpack.c.h.s8.bf16 %v811_v12 }
 0x2fc   :  { %1480 = vmatpush1.bf16.msra.mxu1 %v1219_v17  ;;  %v1275_v17 = vunpack.c.l.s8.bf16 %v811_v12  ;;  %v843_v12 = vld [vmem:[#allocation3 + $0x780] sm:$0xff] }
 0x2fd   :  { %1644 = vmatpush1.bf16.msra.mxu0 %v1221_v19  ;;  %1481 = vmatprep.subr.bf16.mxu1 %v1228_v20  ;;  %v1284_v19 = vunpack.c.h.s8.bf16 %v812_v0  ;;  %v1286_v20 = vunpack.c.h.s8.bf16 %v814_v1  ;;  %v844_v0 = vld [vmem:[#allocation3 + $0x788] sm:$0xff]  ;;  %v846_v1 = vld [vmem:[#allocation3 + $0x798] sm:$0xff] }
 0x2fe   :  { %1645 = vmatprep.subr.bf16.mxu0 %v1230_v22  ;;  %v822_v22 = vld [vmem:[#allocation3 + $0x6d8] sm:$0xff] }
 0x2ff   :  { %v1302_v34 = vunpack.c.h.s8.bf16 %v822_v22 }
 0x300   :  { %1482 = vmatpush1.bf16.msra.mxu1 %v1227_v25  ;;  %v1292_v25 = vunpack.c.l.s8.bf16 %v820_v21  ;;  %v1350_v21 = vunpack.c.h.s8.bf16 %v846_v1 }
 0x301   :  { %1646 = vmatpush1.bf16.msra.mxu0 %v1229_v27  ;;  %1483 = vmatprep.subr.bf16.mxu1 %v1236_v29  ;;  %v1294_v27 = vunpack.c.l.s8.bf16 %v822_v22  ;;  %v821_v29 = vld [vmem:[#allocation3 + $0x6d0] sm:$0xff]  ;;  %v852_v22 = vld [vmem:[#allocation3 + $0x7c8] sm:$0xff] }
 0x302   :  { %1647 = vmatprep.subr.bf16.mxu0 %v1238_v31  ;;  %v1291_v31 = vunpack.c.l.s8.bf16 %v819_v26  ;;  %v1293_v32 = vunpack.c.l.s8.bf16 %v821_v29  ;;  %v1364_v14 = vunpack.c.h.s8.bf16 %v852_v22 }
 0x304   :  { %1484 = vmatpush1.bf16.msra.mxu1 %v1235_v35  ;;  %v828_v35 = vld [vmem:[#allocation3 + $0x708] sm:$0xff] }
 0x305   :  { %1648 = vmatpush1.bf16.msra.mxu0 %v1237_v7  ;;  %1494 = vmatprep.subr.bf16.mxu1 %v1244_v36  ;;  %v1299_v7 = vunpack.c.h.s8.bf16 %v819_v26  ;;  %v1301_v36 = vunpack.c.h.s8.bf16 %v821_v29  ;;  %v1308_v52 = vunpack.c.l.s8.bf16 %v828_v35  ;;  %v851_v29 = vld [vmem:[#allocation3 + $0x7c0] sm:$0xff] }
 0x306   :  { %1658 = vmatprep.subr.bf16.mxu0 %v1246_v48  ;;  %v827_v48 = vld [vmem:[#allocation3 + $0x700] sm:$0xff] }
 0x307   :  { %1486 = vmatmul.mubr.bf16.vlgmr.msra.gmra.mrb[8].mxu1 %v3559_v43 }
 0x308   :  { %1650 = vmatmul.mubr.bf16.vlgmr.msra.gmra.mrb[12].mxu0 %v3559_v43  ;;  %1495 = vmatpush1.bf16.msra.mxu1 %v1243_v42  ;;  %v1307_v42 = vunpack.c.l.s8.bf16 %v827_v48 }
 0x309   :  { %1526 = vmatprep.mubr.bf16.mxu1 %v3561_v46  ;;  %1659 = vmatpush1.bf16.msra.mxu0 %v1245_v53  ;;  %v1309_v53 = vunpack.c.l.s8.bf16 %v829_v41 }
 0x30a   :  { %1690 = vmatprep.mubr.bf16.mxu0 %v3561_v46  ;;  %1496 = vmatprep.subr.bf16.mxu1 %v1252_v44  ;;  %v1316_v44 = vunpack.c.h.s8.bf16 %v828_v35 }
 0x30b   :  { %1660 = vmatprep.subr.bf16.mxu0 %v1254_v47  ;;  %v836_v47 = vld [vmem:[#allocation3 + $0x748] sm:$0xff] }
 0x30c   :  { %1497 = vmatpush1.bf16.msra.mxu1 %v1251_v51  ;;  %v1315_v51 = vunpack.c.h.s8.bf16 %v827_v48  ;;  %v1363_v48 = vunpack.c.h.s8.bf16 %v851_v29 }
 0x30d   :  { %1661 = vmatpush1.bf16.msra.mxu0 %v1253_v54  ;;  %1498 = vmatprep.subr.bf16.mxu1 %v1260_v55  ;;  %v1317_v54 = vunpack.c.h.s8.bf16 %v829_v41  ;;  %v1324_v55 = vunpack.c.l.s8.bf16 %v836_v47 }
 0x30e   :  { %1662 = vmatprep.subr.bf16.mxu0 %v1262_v57  ;;  %v1326_v57 = vunpack.c.l.s8.bf16 %v838_v50 }
 0x310   :  { %1499 = vmatpush1.bf16.msra.mxu1 %v1259_v59  ;;  %v1323_v59 = vunpack.c.l.s8.bf16 %v835_v56 }
 0x311   :  { %1663 = vmatpush1.bf16.msra.mxu0 %v1261_v60  ;;  %1500 = vmatprep.subr.bf16.mxu1 %v1268_v61  ;;  %v1325_v60 = vunpack.c.l.s8.bf16 %v837_v58  ;;  %v1332_v61 = vunpack.c.h.s8.bf16 %v836_v47 }
 0x312   :  { %1664 = vmatprep.subr.bf16.mxu0 %v1270_v62  ;;  %v1334_v62 = vunpack.c.h.s8.bf16 %v838_v50 }
 0x314   :  { %1501 = vmatpush1.bf16.msra.mxu1 %v1267_v3  ;;  %v1331_v3 = vunpack.c.h.s8.bf16 %v835_v56  ;;  %v618_v56 = vld [vmem:[#allocation3 + $0x78] sm:$0xff] }
 0x315   :  { %1665 = vmatpush1.bf16.msra.mxu0 %v1269_v10  ;;  %1502 = vmatprep.subr.bf16.mxu1 %v1276_v11  ;;  %v1333_v10 = vunpack.c.h.s8.bf16 %v837_v58  ;;  %v1340_v11 = vunpack.c.l.s8.bf16 %v844_v0 }
 0x316   :  { %1666 = vmatprep.subr.bf16.mxu0 %v1278_v13  ;;  %v1342_v13 = vunpack.c.l.s8.bf16 %v846_v1 }
 0x318   :  { %1503 = vmatpush1.bf16.msra.mxu1 %v1275_v17  ;;  %v1339_v17 = vunpack.c.l.s8.bf16 %v843_v12 }
 0x319   :  { %1667 = vmatpush1.bf16.msra.mxu0 %v1277_v18  ;;  %1504 = vmatprep.subr.bf16.mxu1 %v1284_v19  ;;  %v3568_v18 = vsub.s32 6, %v3483_v5  ;;  %v1341_v19 = vunpack.c.l.s8.bf16 %v845_v16  ;;  %v1349_v5 = vunpack.c.h.s8.bf16 %v845_v16 }
 0x31a   :  { %1668 = vmatprep.subr.bf16.mxu0 %v1286_v20  ;;  %v1348_v20 = vunpack.c.h.s8.bf16 %v844_v0 }
 0x31c   :  { %1505 = vmatpush1.bf16.msra.mxu1 %v1283_v23  ;;  %v854_v23 = vld [vmem:[#allocation3 + $0x7d8] sm:$0xff] }
 0x31d   :  { %1669 = vmatpush1.bf16.msra.mxu0 %v1285_v24  ;;  %1506 = vmatprep.subr.bf16.mxu1 %v1292_v25  ;;  %v1347_v24 = vunpack.c.h.s8.bf16 %v843_v12  ;;  %v3198_v25 = vld [vmem:[%s3870_s8] sm:$0xff]  ;;  %v626_v12 = vld [vmem:[#allocation3 + $0xb8] sm:$0xff] }
 0x31e   :  { %1670 = vmatprep.subr.bf16.mxu0 %v1294_v27  ;;  %v242_v26 = vrot.slane %v3198_v25, %v3568_v18  ;;  %v1356_v27 = vunpack.c.l.s8.bf16 %v852_v22  ;;  %v632_v25 = vld [vmem:[#allocation3 + $0xe8] sm:$0xff] }
 0x320   :  { %1507 = vmatpush1.bf16.msra.mxu1 %v1291_v31  ;;  %v1358_v31 = vunpack.c.l.s8.bf16 %v854_v23 }
 0x321   :  { %1671 = vmatpush1.bf16.msra.mxu0 %v1293_v32  ;;  %1508 = vmatprep.subr.bf16.mxu1 %v1300_v33  ;;  %v853_v32 = vld [vmem:[#allocation3 + $0x7d0] sm:$0xff]  ;;  %v1355_v33 = vunpack.c.l.s8.bf16 %v851_v29  ;;  %v912_v29 = vunpack.c.l.s8.bf16 %v632_v25 }
 0x322   :  { %1672 = vmatprep.subr.bf16.mxu0 %v1302_v34  ;;  %v581_v34 = vadd.f32 %v3521_v49, %v242_v26  ;;  %v1357_v35 = vunpack.c.l.s8.bf16 %v853_v32  ;;  %v1365_v41 = vunpack.c.h.s8.bf16 %v853_v32  ;;  %v634_v26 = vld [vmem:[#allocation3 + $0xf8] sm:$0xff] }
 0x323   :  { %v914_v32 = vunpack.c.l.s8.bf16 %v634_v26 }
 0x324   :  { %1509 = vmatpush1.bf16.msra.mxu1 %v1299_v7  ;;  %v1366_v7 = vunpack.c.h.s8.bf16 %v854_v23 }
 0x325   :  { %1673 = vmatpush1.bf16.msra.mxu0 %v1301_v36  ;;  %1510 = vmatprep.subr.bf16.mxu1 %v1308_v52  ;;  %v608_v36 = vld [vmem:[#allocation3 + $0x28] sm:$0xff]  ;;  %v610_v52 = vld [vmem:[#allocation3 + $0x38] sm:$0xff] }
 0x326   :  { %1674 = vmatprep.subr.bf16.mxu0 %v1310_v40  ;;  %v593_v40 = vmax.f32 %v581_v34, 0.0 }
 0x328   :  { %1511 = vmatpush1.bf16.msra.mxu1 %v1307_v42  ;;  %v864_v42 = vunpack.c.l.s8.bf16 %v608_v36  ;;  %v3575_v47 = vpack.c.bf16 %v593_v40, %v593_v40 }
 0x329   :  { %1675 = vmatpush1.bf16.msra.mxu0 %v1309_v53  ;;  %1512 = vmatprep.subr.bf16.mxu1 %v1316_v44  ;;  %v607_v53 = vld [vmem:[#allocation3 + $0x20] sm:$0xff]  ;;  %v866_v44 = vunpack.c.l.s8.bf16 %v610_v52 }
 0x32a   :  { %1676 = vmatprep.subr.bf16.mxu0 %v1318_v45  ;;  %v609_v45 = vld [vmem:[#allocation3 + $0x30] sm:$0xff]  ;;  %v863_v49 = vunpack.c.l.s8.bf16 %v607_v53 }
 0x32b   :  { %v865_v50 = vunpack.c.l.s8.bf16 %v609_v45  ;;  %v873_v58 = vunpack.c.h.s8.bf16 %v609_v45 }
 0x32c   :  { %1513 = vmatpush1.bf16.msra.mxu1 %v1315_v51  ;;  %v872_v51 = vunpack.c.h.s8.bf16 %v608_v36  ;;  %v640_v36 = vld [vmem:[#allocation3 + $0x128] sm:$0xff] }
 0x32d   :  { %1677 = vmatpush1.bf16.msra.mxu0 %v1317_v54  ;;  %1514 = vmatprep.subr.bf16.mxu1 %v1324_v55  ;;  %v616_v54 = vld [vmem:[#allocation3 + $0x68] sm:$0xff]  ;;  %v874_v55 = vunpack.c.h.s8.bf16 %v610_v52  ;;  %v642_v52 = vld [vmem:[#allocation3 + $0x138] sm:$0xff] }
 0x32e   :  { %1678 = vmatprep.subr.bf16.mxu0 %v1326_v57  ;;  %v871_v57 = vunpack.c.h.s8.bf16 %v607_v53  ;;  %v930_v53 = vunpack.c.l.s8.bf16 %v642_v52 }
 0x330   :  { %1515 = vmatpush1.bf16.msra.mxu1 %v1323_v59  ;;  %v880_v59 = vunpack.c.l.s8.bf16 %v616_v54 }
 0x331   :  { %1679 = vmatpush1.bf16.msra.mxu0 %v1325_v60  ;;  %1516 = vmatprep.subr.bf16.mxu1 %v1332_v61  ;;  %v615_v60 = vld [vmem:[#allocation3 + $0x60] sm:$0xff]  ;;  %v882_v61 = vunpack.c.l.s8.bf16 %v618_v56 }
 0x332   :  { %1680 = vmatprep.subr.bf16.mxu0 %v1334_v62  ;;  %v617_v62 = vld [vmem:[#allocation3 + $0x70] sm:$0xff]  ;;  %v879_v0 = vunpack.c.l.s8.bf16 %v615_v60 }
 0x333   :  { %v881_v1 = vunpack.c.l.s8.bf16 %v617_v62  ;;  %v889_v16 = vunpack.c.h.s8.bf16 %v617_v62 }
 0x334   :  { %1517 = vmatpush1.bf16.msra.mxu1 %v1331_v3  ;;  %v888_v3 = vunpack.c.h.s8.bf16 %v616_v54  ;;  %v648_v54 = vld [vmem:[#allocation3 + $0x168] sm:$0xff] }
 0x335   :  { %1681 = vmatpush1.bf16.msra.mxu0 %v1333_v10  ;;  %1518 = vmatprep.subr.bf16.mxu1 %v1340_v11  ;;  %v890_v10 = vunpack.c.h.s8.bf16 %v618_v56  ;;  %v624_v11 = vld [vmem:[#allocation3 + $0xa8] sm:$0xff] }
 0x336   :  { %1682 = vmatprep.subr.bf16.mxu0 %v1342_v13  ;;  %v887_v13 = vunpack.c.h.s8.bf16 %v615_v60  ;;  %v904_v23 = vunpack.c.h.s8.bf16 %v624_v11 }
 0x338   :  { %1519 = vmatpush1.bf16.msra.mxu1 %v1339_v17  ;;  %v623_v17 = vld [vmem:[#allocation3 + $0xa0] sm:$0xff] }
 0x339   :  { %1683 = vmatpush1.bf16.msra.mxu0 %v1341_v19  ;;  %1520 = vmatprep.subr.bf16.mxu1 %v1348_v20  ;;  %v898_v19 = vunpack.c.l.s8.bf16 %v626_v12  ;;  %v625_v20 = vld [vmem:[#allocation3 + $0xb0] sm:$0xff] }
 0x33a   :  { %1684 = vmatprep.subr.bf16.mxu0 %v1350_v21  ;;  %v895_v21 = vunpack.c.l.s8.bf16 %v623_v17  ;;  %v897_v22 = vunpack.c.l.s8.bf16 %v625_v20 }
 0x33c   :  { %1521 = vmatpush1.bf16.msra.mxu1 %v1347_v24  ;;  %v906_v24 = vunpack.c.h.s8.bf16 %v626_v12 }
 0x33d   :  { %1685 = vmatpush1.bf16.msra.mxu0 %v1349_v5  ;;  %1522 = vmatprep.subr.bf16.mxu1 %v1356_v27  ;;  %v903_v5 = vunpack.c.h.s8.bf16 %v623_v17  ;;  %v905_v27 = vunpack.c.h.s8.bf16 %v625_v20 }
 0x33e   :  { %1686 = vmatprep.subr.bf16.mxu0 %v1358_v31  ;;  %v631_v31 = vld [vmem:[#allocation3 + $0xe0] sm:$0xff] }
 0x33f   :  { %v911_v34 = vunpack.c.l.s8.bf16 %v631_v31 }
 0x340   :  { %1523 = vmatpush1.bf16.msra.mxu1 %v1355_v33  ;;  %v633_v33 = vld [vmem:[#allocation3 + $0xf0] sm:$0xff] }
 0x341   :  { %1687 = vmatpush1.bf16.msra.mxu0 %v1357_v35  ;;  %1524 = vmatprep.subr.bf16.mxu1 %v1364_v14  ;;  %v913_v35 = vunpack.c.l.s8.bf16 %v633_v33  ;;  %v920_v14 = vunpack.c.h.s8.bf16 %v632_v25  ;;  %v921_v40 = vunpack.c.h.s8.bf16 %v633_v33  ;;  %v666_v25 = vld [vmem:[#allocation3 + $0x1f8] sm:$0xff] }
 0x342   :  { %1688 = vmatprep.subr.bf16.mxu0 %v1366_v7  ;;  %v922_v7 = vunpack.c.h.s8.bf16 %v634_v26 }
 0x344   :  { %1525 = vmatpush1.bf16.msra.mxu1 %v1363_v48  ;;  %v919_v48 = vunpack.c.h.s8.bf16 %v631_v31  ;;  %v978_v31 = vunpack.c.l.s8.bf16 %v666_v25 }
 0x345   :  { %1689 = vmatpush1.bf16.msra.mxu0 %v1365_v41  ;;  %1699 = vmatprep.subr.bf16.mxu1 %v864_v42  ;;  %v928_v41 = vunpack.c.l.s8.bf16 %v640_v36  ;;  %v639_v42 = vld [vmem:[#allocation3 + $0x120] sm:$0xff] }
 0x346   :  { %1863 = vmatprep.subr.bf16.mxu0 %v866_v44  ;;  %v641_v44 = vld [vmem:[#allocation3 + $0x130] sm:$0xff]  ;;  %v927_v45 = vunpack.c.l.s8.bf16 %v639_v42  ;;  %v935_v56 = vunpack.c.h.s8.bf16 %v639_v42 }
 0x347   :  { %1527 = vmatmul.mubr.bf16.vlgmr.msra.gmra.mrb[8].mxu1 %v3575_v47 }
 0x348   :  { %1691 = vmatmul.mubr.bf16.vlgmr.msra.gmra.mrb[12].mxu0 %v3575_v47  ;;  %1700 = vmatpush1.bf16.msra.mxu1 %v863_v49  ;;  %v929_v49 = vunpack.c.l.s8.bf16 %v641_v44 }
 0x349   :  { %1731 = vmatprep.mubr.bf16.mxu1 %v3507_v30  ;;  %1864 = vmatpush1.bf16.msra.mxu0 %v865_v50  ;;  %v936_v50 = vunpack.c.h.s8.bf16 %v640_v36  ;;  %v674_v36 = vld [vmem:[#allocation3 + $0x238] sm:$0xff] }
 0x34a   :  { %1895 = vmatprep.mubr.bf16.mxu0 %v3507_v30  ;;  %1701 = vmatprep.subr.bf16.mxu1 %v872_v51  ;;  %v896_v30 = vunpack.c.l.s8.bf16 %v624_v11  ;;  %v938_v51 = vunpack.c.h.s8.bf16 %v642_v52  ;;  %v658_v11 = vld [vmem:[#allocation3 + $0x1b8] sm:$0xff]  ;;  %v994_v42 = vunpack.c.l.s8.bf16 %v674_v36 }
 0x34b   :  { %1865 = vmatprep.subr.bf16.mxu0 %v874_v55  ;;  %v650_v55 = vld [vmem:[#allocation3 + $0x178] sm:$0xff]  ;;  %v962_v17 = vunpack.c.l.s8.bf16 %v658_v11 }
 0x34c   :  { %1702 = vmatpush1.bf16.msra.mxu1 %v871_v57  ;;  %v937_v57 = vunpack.c.h.s8.bf16 %v641_v44  ;;  %v946_v60 = vunpack.c.l.s8.bf16 %v650_v55 }
 0x34d   :  { %1866 = vmatpush1.bf16.msra.mxu0 %v873_v58  ;;  %1703 = vmatprep.subr.bf16.mxu1 %v880_v59  ;;  %v944_v58 = vunpack.c.l.s8.bf16 %v648_v54  ;;  %v647_v59 = vld [vmem:[#allocation3 + $0x160] sm:$0xff] }
 0x34e   :  { %1867 = vmatprep.subr.bf16.mxu0 %v882_v61  ;;  %v649_v61 = vld [vmem:[#allocation3 + $0x170] sm:$0xff]  ;;  %v943_v62 = vunpack.c.l.s8.bf16 %v647_v59  ;;  %v951_v12 = vunpack.c.h.s8.bf16 %v647_v59 }
 0x350   :  { %1704 = vmatpush1.bf16.msra.mxu1 %v879_v0  ;;  %v945_v0 = vunpack.c.l.s8.bf16 %v649_v61 }
 0x351   :  { %1868 = vmatpush1.bf16.msra.mxu0 %v881_v1  ;;  %1705 = vmatprep.subr.bf16.mxu1 %v888_v3  ;;  %v952_v1 = vunpack.c.h.s8.bf16 %v648_v54  ;;  %v954_v3 = vunpack.c.h.s8.bf16 %v650_v55  ;;  %v682_v54 = vld [vmem:[#allocation3 + $0x278] sm:$0xff] }
 0x352   :  { %1869 = vmatprep.subr.bf16.mxu0 %v890_v10  ;;  %v656_v10 = vld [vmem:[#allocation3 + $0x1a8] sm:$0xff]  ;;  %v1010_v59 = vunpack.c.l.s8.bf16 %v682_v54 }
 0x354   :  { %1706 = vmatpush1.bf16.msra.mxu1 %v887_v13  ;;  %v953_v13 = vunpack.c.h.s8.bf16 %v649_v61 }
 0x355   :  { %1870 = vmatpush1.bf16.msra.mxu0 %v889_v16  ;;  %1707 = vmatprep.subr.bf16.mxu1 %v896_v30  ;;  %v960_v16 = vunpack.c.l.s8.bf16 %v656_v10  ;;  %v655_v30 = vld [vmem:[#allocation3 + $0x1a0] sm:$0xff] }
 0x356   :  { %1871 = vmatprep.subr.bf16.mxu0 %v898_v19  ;;  %v657_v19 = vld [vmem:[#allocation3 + $0x1b0] sm:$0xff]  ;;  %v959_v20 = vunpack.c.l.s8.bf16 %v655_v30  ;;  %v967_v26 = vunpack.c.h.s8.bf16 %v655_v30 }
 0x358   :  { %1708 = vmatpush1.bf16.msra.mxu1 %v895_v21  ;;  %v961_v21 = vunpack.c.l.s8.bf16 %v657_v19 }
 0x359   :  { %1872 = vmatpush1.bf16.msra.mxu0 %v897_v22  ;;  %1709 = vmatprep.subr.bf16.mxu1 %v904_v23  ;;  %v968_v22 = vunpack.c.h.s8.bf16 %v656_v10  ;;  %v970_v23 = vunpack.c.h.s8.bf16 %v658_v11 }
 0x35a   :  { %1873 = vmatprep.subr.bf16.mxu0 %v906_v24  ;;  %v664_v24 = vld [vmem:[#allocation3 + $0x1e8] sm:$0xff] }
 0x35c   :  { %1710 = vmatpush1.bf16.msra.mxu1 %v903_v5  ;;  %v969_v5 = vunpack.c.h.s8.bf16 %v657_v19 }
 0x35d   :  { %1874 = vmatpush1.bf16.msra.mxu0 %v905_v27  ;;  %1711 = vmatprep.subr.bf16.mxu1 %v912_v29  ;;  %v976_v27 = vunpack.c.l.s8.bf16 %v664_v24  ;;  %v663_v29 = vld [vmem:[#allocation3 + $0x1e0] sm:$0xff] }
 0x35e   :  { %1875 = vmatprep.subr.bf16.mxu0 %v914_v32  ;;  %v665_v32 = vld [vmem:[#allocation3 + $0x1f0] sm:$0xff]  ;;  %v975_v33 = vunpack.c.l.s8.bf16 %v663_v29  ;;  %v983_v52 = vunpack.c.h.s8.bf16 %v663_v29 }
 0x360   :  { %1712 = vmatpush1.bf16.msra.mxu1 %v911_v34  ;;  %v977_v34 = vunpack.c.l.s8.bf16 %v665_v32 }
 0x361   :  { %1876 = vmatpush1.bf16.msra.mxu0 %v913_v35  ;;  %1713 = vmatprep.subr.bf16.mxu1 %v920_v14  ;;  %v984_v35 = vunpack.c.h.s8.bf16 %v664_v24  ;;  %v986_v14 = vunpack.c.h.s8.bf16 %v666_v25 }
 0x362   :  { %1877 = vmatprep.subr.bf16.mxu0 %v922_v7  ;;  %v672_v7 = vld [vmem:[#allocation3 + $0x228] sm:$0xff] }
 0x364   :  { %1714 = vmatpush1.bf16.msra.mxu1 %v919_v48  ;;  %v985_v48 = vunpack.c.h.s8.bf16 %v665_v32 }
 0x365   :  { %1878 = vmatpush1.bf16.msra.mxu0 %v921_v40  ;;  %1715 = vmatprep.subr.bf16.mxu1 %v928_v41  ;;  %v992_v40 = vunpack.c.l.s8.bf16 %v672_v7  ;;  %v671_v41 = vld [vmem:[#allocation3 + $0x220] sm:$0xff] }
 0x366   :  { %1879 = vmatprep.subr.bf16.mxu0 %v930_v53  ;;  %v673_v53 = vld [vmem:[#allocation3 + $0x230] sm:$0xff]  ;;  %v991_v44 = vunpack.c.l.s8.bf16 %v671_v41  ;;  %v999_v55 = vunpack.c.h.s8.bf16 %v671_v41 }
 0x368   :  { %1716 = vmatpush1.bf16.msra.mxu1 %v927_v45  ;;  %v993_v45 = vunpack.c.l.s8.bf16 %v673_v53 }
 0x369   :  { %1880 = vmatpush1.bf16.msra.mxu0 %v929_v49  ;;  %1717 = vmatprep.subr.bf16.mxu1 %v936_v50  ;;  %v1000_v49 = vunpack.c.h.s8.bf16 %v672_v7  ;;  %v680_v50 = vld [vmem:[#allocation3 + $0x268] sm:$0xff] }
 0x36a   :  { %1881 = vmatprep.subr.bf16.mxu0 %v938_v51  ;;  %v1002_v51 = vunpack.c.h.s8.bf16 %v674_v36 }
 0x36c   :  { %1718 = vmatpush1.bf16.msra.mxu1 %v935_v56  ;;  %v1001_v56 = vunpack.c.h.s8.bf16 %v673_v53 }
 0x36d   :  { %1882 = vmatpush1.bf16.msra.mxu0 %v937_v57  ;;  %1719 = vmatprep.subr.bf16.mxu1 %v944_v58  ;;  %v1008_v57 = vunpack.c.l.s8.bf16 %v680_v50  ;;  %v679_v58 = vld [vmem:[#allocation3 + $0x260] sm:$0xff] }
 0x36e   :  { %1883 = vmatprep.subr.bf16.mxu0 %v946_v60  ;;  %v681_v60 = vld [vmem:[#allocation3 + $0x270] sm:$0xff]  ;;  %v1007_v61 = vunpack.c.l.s8.bf16 %v679_v58  ;;  %v1015_v10 = vunpack.c.h.s8.bf16 %v679_v58 }
 0x36f   :  { %v1017_v11 = vunpack.c.h.s8.bf16 %v681_v60 }
 0x370   :  { %1720 = vmatpush1.bf16.msra.mxu1 %v943_v62  ;;  %v1009_v62 = vunpack.c.l.s8.bf16 %v681_v60 }
 0x371   :  { %1884 = vmatpush1.bf16.msra.mxu0 %v945_v0  ;;  %1721 = vmatprep.subr.bf16.mxu1 %v952_v1  ;;  %v1018_v0 = vunpack.c.h.s8.bf16 %v682_v54  ;;  %v688_v1 = vld [vmem:[#allocation3 + $0x2a8] sm:$0xff] }
 0x372   :  { %1885 = vmatprep.subr.bf16.mxu0 %v954_v3  ;;  %v690_v3 = vld [vmem:[#allocation3 + $0x2b8] sm:$0xff]  ;;  %v1032_v19 = vunpack.c.h.s8.bf16 %v688_v1 }
 0x374   :  { %1722 = vmatpush1.bf16.msra.mxu1 %v951_v12  ;;  %v687_v12 = vld [vmem:[#allocation3 + $0x2a0] sm:$0xff] }
 0x375   :  { %1886 = vmatpush1.bf16.msra.mxu0 %v953_v13  ;;  %1723 = vmatprep.subr.bf16.mxu1 %v960_v16  ;;  %v1026_v13 = vunpack.c.l.s8.bf16 %v690_v3  ;;  %v689_v16 = vld [vmem:[#allocation3 + $0x2b0] sm:$0xff]  ;;  %v1023_v30 = vunpack.c.l.s8.bf16 %v687_v12 }
 0x376   :  { %1887 = vmatprep.subr.bf16.mxu0 %v962_v17  ;;  %v1025_v17 = vunpack.c.l.s8.bf16 %v689_v16  ;;  %v1033_v24 = vunpack.c.h.s8.bf16 %v689_v16 }
 0x378   :  { %1724 = vmatpush1.bf16.msra.mxu1 %v959_v20  ;;  %v1034_v20 = vunpack.c.h.s8.bf16 %v690_v3 }
 0x379   :  { %1888 = vmatpush1.bf16.msra.mxu0 %v961_v21  ;;  %1725 = vmatprep.subr.bf16.mxu1 %v968_v22  ;;  %v696_v21 = vld [vmem:[#allocation3 + $0x2e8] sm:$0xff]  ;;  %v698_v22 = vld [vmem:[#allocation3 + $0x2f8] sm:$0xff] }
 0x37a   :  { %1889 = vmatprep.subr.bf16.mxu0 %v970_v23  ;;  %v1031_v23 = vunpack.c.h.s8.bf16 %v687_v12  ;;  %v1040_v25 = vunpack.c.l.s8.bf16 %v696_v21  ;;  %v1048_v32 = vunpack.c.h.s8.bf16 %v696_v21 }
 0x37c   :  { %1726 = vmatpush1.bf16.msra.mxu1 %v967_v26  ;;  %v695_v26 = vld [vmem:[#allocation3 + $0x2e0] sm:$0xff] }
 0x37d   :  { %1890 = vmatpush1.bf16.msra.mxu0 %v969_v5  ;;  %1727 = vmatprep.subr.bf16.mxu1 %v976_v27  ;;  %v1042_v5 = vunpack.c.l.s8.bf16 %v698_v22  ;;  %v697_v27 = vld [vmem:[#allocation3 + $0x2f0] sm:$0xff]  ;;  %v1039_v29 = vunpack.c.l.s8.bf16 %v695_v26 }
 0x37e   :  { %1891 = vmatprep.subr.bf16.mxu0 %v978_v31  ;;  %v1041_v31 = vunpack.c.l.s8.bf16 %v697_v27  ;;  %v1049_v7 = vunpack.c.h.s8.bf16 %v697_v27 }
 0x380   :  { %1728 = vmatpush1.bf16.msra.mxu1 %v975_v33  ;;  %v1050_v33 = vunpack.c.h.s8.bf16 %v698_v22 }
 0x381   :  { %1892 = vmatpush1.bf16.msra.mxu0 %v977_v34  ;;  %1729 = vmatprep.subr.bf16.mxu1 %v984_v35  ;;  %v704_v34 = vld [vmem:[#allocation3 + $0x328] sm:$0xff]  ;;  %v706_v35 = vld [vmem:[#allocation3 + $0x338] sm:$0xff] }
 0x382   :  { %1893 = vmatprep.subr.bf16.mxu0 %v986_v14  ;;  %v1047_v14 = vunpack.c.h.s8.bf16 %v695_v26  ;;  %v1056_v36 = vunpack.c.l.s8.bf16 %v704_v34  ;;  %v1064_v53 = vunpack.c.h.s8.bf16 %v704_v34 }
 0x384   :  { %1730 = vmatpush1.bf16.msra.mxu1 %v983_v52  ;;  %v703_v52 = vld [vmem:[#allocation3 + $0x320] sm:$0xff] }
 0x385   :  { %1894 = vmatpush1.bf16.msra.mxu0 %v985_v48  ;;  %1740 = vmatprep.subr.bf16.mxu1 %v992_v40  ;;  %v1058_v48 = vunpack.c.l.s8.bf16 %v706_v35  ;;  %v705_v40 = vld [vmem:[#allocation3 + $0x330] sm:$0xff]  ;;  %v1055_v41 = vunpack.c.l.s8.bf16 %v703_v52 }
 0x386   :  { %1904 = vmatprep.subr.bf16.mxu0 %v994_v42  ;;  %v1057_v42 = vunpack.c.l.s8.bf16 %v705_v40 }
 0x387   :  { %1732 = vmatmul.mubr.bf16.vlgmr.msra.gmra.mrb[12].mxu1 %v3509_v28 }
 0x388   :  { %1896 = vmatmul.mubr.bf16.vlgmr.msra.gmra.mrb[16].mxu0 %v3509_v28  ;;  %1741 = vmatpush1.bf16.msra.mxu1 %v991_v44  ;;  %v1016_v28 = vunpack.c.h.s8.bf16 %v680_v50  ;;  %v1066_v44 = vunpack.c.h.s8.bf16 %v706_v35  ;;  %v1063_v50 = vunpack.c.h.s8.bf16 %v703_v52 }
 0x389   :  { %1772 = vmatprep.mubr.bf16.mxu1 %v3513_v37  ;;  %1905 = vmatpush1.bf16.msra.mxu0 %v993_v45  ;;  %v712_v45 = vld [vmem:[#allocation3 + $0x368] sm:$0xff] }
 0x38a   :  { %1936 = vmatprep.mubr.bf16.mxu0 %v3513_v37  ;;  %1742 = vmatprep.subr.bf16.mxu1 %v1000_v49  ;;  %v1024_v37 = vunpack.c.l.s8.bf16 %v688_v1  ;;  %v714_v49 = vld [vmem:[#allocation3 + $0x378] sm:$0xff]  ;;  %v1072_v54 = vunpack.c.l.s8.bf16 %v712_v45  ;;  %v1080_v60 = vunpack.c.h.s8.bf16 %v712_v45 }
 0x38b   :  { %1906 = vmatprep.subr.bf16.mxu0 %v1002_v51  ;;  %v1065_v51 = vunpack.c.h.s8.bf16 %v705_v40 }
 0x38c   :  { %1743 = vmatpush1.bf16.msra.mxu1 %v999_v55  ;;  %v711_v55 = vld [vmem:[#allocation3 + $0x360] sm:$0xff] }
 0x38d   :  { %1907 = vmatpush1.bf16.msra.mxu0 %v1001_v56  ;;  %1744 = vmatprep.subr.bf16.mxu1 %v1008_v57  ;;  %v1074_v56 = vunpack.c.l.s8.bf16 %v714_v49  ;;  %v713_v57 = vld [vmem:[#allocation3 + $0x370] sm:$0xff]  ;;  %v1071_v58 = vunpack.c.l.s8.bf16 %v711_v55 }
 0x38e   :  { %1908 = vmatprep.subr.bf16.mxu0 %v1010_v59  ;;  %v1073_v59 = vunpack.c.l.s8.bf16 %v713_v57  ;;  %v1081_v1 = vunpack.c.h.s8.bf16 %v713_v57 }
 0x390   :  { %1745 = vmatpush1.bf16.msra.mxu1 %v1007_v61  ;;  %v1082_v61 = vunpack.c.h.s8.bf16 %v714_v49 }
 0x391   :  { %1909 = vmatpush1.bf16.msra.mxu0 %v1009_v62  ;;  %1746 = vmatprep.subr.bf16.mxu1 %v1016_v28  ;;  %v720_v62 = vld [vmem:[#allocation3 + $0x3a8] sm:$0xff]  ;;  %v722_v28 = vld [vmem:[#allocation3 + $0x3b8] sm:$0xff] }
 0x392   :  { %1910 = vmatprep.subr.bf16.mxu0 %v1018_v0  ;;  %v1079_v0 = vunpack.c.h.s8.bf16 %v711_v55  ;;  %v1088_v3 = vunpack.c.l.s8.bf16 %v720_v62  ;;  %v1096_v16 = vunpack.c.h.s8.bf16 %v720_v62  ;;  %v751_v62 = vld [vmem:[#allocation3 + $0x4a0] sm:$0xff] }
 0x394   :  { %1747 = vmatpush1.bf16.msra.mxu1 %v1015_v10  ;;  %v719_v10 = vld [vmem:[#allocation3 + $0x3a0] sm:$0xff] }
 0x395   :  { %1911 = vmatpush1.bf16.msra.mxu0 %v1017_v11  ;;  %1748 = vmatprep.subr.bf16.mxu1 %v1024_v37  ;;  %v1090_v11 = vunpack.c.l.s8.bf16 %v722_v28  ;;  %v721_v37 = vld [vmem:[#allocation3 + $0x3b0] sm:$0xff]  ;;  %v1087_v12 = vunpack.c.l.s8.bf16 %v719_v10 }
 0x396   :  { %1912 = vmatprep.subr.bf16.mxu0 %v1026_v13  ;;  %v1089_v13 = vunpack.c.l.s8.bf16 %v721_v37  ;;  %v1097_v21 = vunpack.c.h.s8.bf16 %v721_v37  ;;  %v760_v37 = vld [vmem:[#allocation3 + $0x4e8] sm:$0xff] }
 0x398   :  { %1749 = vmatpush1.bf16.msra.mxu1 %v1023_v30  ;;  %v1098_v30 = vunpack.c.h.s8.bf16 %v722_v28 }
 0x399   :  { %1913 = vmatpush1.bf16.msra.mxu0 %v1025_v17  ;;  %1750 = vmatprep.subr.bf16.mxu1 %v1032_v19  ;;  %v728_v17 = vld [vmem:[#allocation3 + $0x3e8] sm:$0xff]  ;;  %v730_v19 = vld [vmem:[#allocation3 + $0x3f8] sm:$0xff] }
 0x39a   :  { %1914 = vmatprep.subr.bf16.mxu0 %v1034_v20  ;;  %v1095_v20 = vunpack.c.h.s8.bf16 %v719_v10  ;;  %v1104_v22 = vunpack.c.l.s8.bf16 %v728_v17  ;;  %v1112_v27 = vunpack.c.h.s8.bf16 %v728_v17  ;;  %v759_v17 = vld [vmem:[#allocation3 + $0x4e0] sm:$0xff] }
 0x39c   :  { %1751 = vmatpush1.bf16.msra.mxu1 %v1031_v23  ;;  %v727_v23 = vld [vmem:[#allocation3 + $0x3e0] sm:$0xff] }
 0x39d   :  { %1915 = vmatpush1.bf16.msra.mxu0 %v1033_v24  ;;  %1752 = vmatprep.subr.bf16.mxu1 %v1040_v25  ;;  %v1106_v24 = vunpack.c.l.s8.bf16 %v730_v19  ;;  %v729_v25 = vld [vmem:[#allocation3 + $0x3f0] sm:$0xff]  ;;  %v1103_v26 = vunpack.c.l.s8.bf16 %v727_v23 }
 0x39e   :  { %1916 = vmatprep.subr.bf16.mxu0 %v1042_v5  ;;  %v1105_v5 = vunpack.c.l.s8.bf16 %v729_v25  ;;  %v1113_v34 = vunpack.c.h.s8.bf16 %v729_v25  ;;  %v768_v25 = vld [vmem:[#allocation3 + $0x528] sm:$0xff] }
 0x3a0   :  { %1753 = vmatpush1.bf16.msra.mxu1 %v1039_v29  ;;  %v1114_v29 = vunpack.c.h.s8.bf16 %v730_v19 }
 0x3a1   :  { %1917 = vmatpush1.bf16.msra.mxu0 %v1041_v31  ;;  %1754 = vmatprep.subr.bf16.mxu1 %v1048_v32  ;;  %v736_v31 = vld [vmem:[#allocation3 + $0x428] sm:$0xff]  ;;  %v738_v32 = vld [vmem:[#allocation3 + $0x438] sm:$0xff] }
 0x3a2   :  { %1918 = vmatprep.subr.bf16.mxu0 %v1050_v33  ;;  %v1111_v33 = vunpack.c.h.s8.bf16 %v727_v23  ;;  %v1120_v35 = vunpack.c.l.s8.bf16 %v736_v31  ;;  %v1128_v40 = vunpack.c.h.s8.bf16 %v736_v31  ;;  %v1176_v23 = vunpack.c.h.s8.bf16 %v760_v37  ;;  %v767_v31 = vld [vmem:[#allocation3 + $0x520] sm:$0xff] }
 0x3a4   :  { %1755 = vmatpush1.bf16.msra.mxu1 %v1047_v14  ;;  %v735_v14 = vld [vmem:[#allocation3 + $0x420] sm:$0xff] }
 0x3a5   :  { %1919 = vmatpush1.bf16.msra.mxu0 %v1049_v7  ;;  %1756 = vmatprep.subr.bf16.mxu1 %v1056_v36  ;;  %v1122_v7 = vunpack.c.l.s8.bf16 %v738_v32  ;;  %v737_v36 = vld [vmem:[#allocation3 + $0x430] sm:$0xff]  ;;  %v1119_v52 = vunpack.c.l.s8.bf16 %v735_v14 }
 0x3a6   :  { %1920 = vmatprep.subr.bf16.mxu0 %v1058_v48  ;;  %v1121_v48 = vunpack.c.l.s8.bf16 %v737_v36  ;;  %v1129_v45 = vunpack.c.h.s8.bf16 %v737_v36  ;;  %v776_v36 = vld [vmem:[#allocation3 + $0x568] sm:$0xff] }
 0x3a8   :  { %1757 = vmatpush1.bf16.msra.mxu1 %v1055_v41  ;;  %v744_v41 = vld [vmem:[#allocation3 + $0x468] sm:$0xff] }
 0x3a9   :  { %1921 = vmatpush1.bf16.msra.mxu0 %v1057_v42  ;;  %1758 = vmatprep.subr.bf16.mxu1 %v1064_v53  ;;  %v1130_v42 = vunpack.c.h.s8.bf16 %v738_v32  ;;  %v746_v53 = vld [vmem:[#allocation3 + $0x478] sm:$0xff]  ;;  %v1136_v49 = vunpack.c.l.s8.bf16 %v744_v41 }
 0x3aa   :  { %1922 = vmatprep.subr.bf16.mxu0 %v1066_v44  ;;  %v1127_v44 = vunpack.c.h.s8.bf16 %v735_v14  ;;  %v1146_v57 = vunpack.c.h.s8.bf16 %v746_v53  ;;  %v1192_v14 = vunpack.c.h.s8.bf16 %v768_v25 }
 0x3ac   :  { %1759 = vmatpush1.bf16.msra.mxu1 %v1063_v50  ;;  %v743_v50 = vld [vmem:[#allocation3 + $0x460] sm:$0xff] }
 0x3ad   :  { %1923 = vmatpush1.bf16.msra.mxu0 %v1065_v51  ;;  %1760 = vmatprep.subr.bf16.mxu1 %v1072_v54  ;;  %v1138_v51 = vunpack.c.l.s8.bf16 %v746_v53  ;;  %v745_v54 = vld [vmem:[#allocation3 + $0x470] sm:$0xff]  ;;  %v1135_v55 = vunpack.c.l.s8.bf16 %v743_v50 }
 0x3ae   :  { %1924 = vmatprep.subr.bf16.mxu0 %v1074_v56  ;;  %v1137_v56 = vunpack.c.l.s8.bf16 %v745_v54 }
 0x3b0   :  { %1761 = vmatpush1.bf16.msra.mxu1 %v1071_v58  ;;  %v752_v58 = vld [vmem:[#allocation3 + $0x4a8] sm:$0xff] }
 0x3b1   :  { %1925 = vmatpush1.bf16.msra.mxu0 %v1073_v59  ;;  %1762 = vmatprep.subr.bf16.mxu1 %v1080_v60  ;;  %v754_v59 = vld [vmem:[#allocation3 + $0x4b8] sm:$0xff]  ;;  %v1143_v60 = vunpack.c.h.s8.bf16 %v743_v50  ;;  %v1160_v10 = vunpack.c.h.s8.bf16 %v752_v58  ;;  %v1208_v50 = vunpack.c.h.s8.bf16 %v776_v36 }
 0x3b2   :  { %1926 = vmatprep.subr.bf16.mxu0 %v1082_v61  ;;  %v1145_v61 = vunpack.c.h.s8.bf16 %v745_v54  ;;  %v1154_v28 = vunpack.c.l.s8.bf16 %v754_v59  ;;  %v784_v54 = vld [vmem:[#allocation3 + $0x5a8] sm:$0xff] }
 0x3b4   :  { %1763 = vmatpush1.bf16.msra.mxu1 %v1079_v0  ;;  %v753_v0 = vld [vmem:[#allocation3 + $0x4b0] sm:$0xff] }
 0x3b5   :  { %1927 = vmatpush1.bf16.msra.mxu0 %v1081_v1  ;;  %1764 = vmatprep.subr.bf16.mxu1 %v1088_v3  ;;  %v1151_v1 = vunpack.c.l.s8.bf16 %v751_v62  ;;  %v1153_v3 = vunpack.c.l.s8.bf16 %v753_v0 }
 0x3b6   :  { %1928 = vmatprep.subr.bf16.mxu0 %v1090_v11  ;;  %v1162_v11 = vunpack.c.h.s8.bf16 %v754_v59 }
 0x3b8   :  { %1765 = vmatpush1.bf16.msra.mxu1 %v1087_v12  ;;  %v762_v12 = vld [vmem:[#allocation3 + $0x4f8] sm:$0xff] }
 0x3b9   :  { %1929 = vmatpush1.bf16.msra.mxu0 %v1089_v13  ;;  %1766 = vmatprep.subr.bf16.mxu1 %v1096_v16  ;;  %v1159_v13 = vunpack.c.h.s8.bf16 %v751_v62  ;;  %v1161_v16 = vunpack.c.h.s8.bf16 %v753_v0  ;;  %v1170_v19 = vunpack.c.l.s8.bf16 %v762_v12  ;;  %v1224_v62 = vunpack.c.h.s8.bf16 %v784_v54  ;;  %v792_v0 = vld [vmem:[#allocation3 + $0x5e8] sm:$0xff] }
 0x3ba   :  { %1930 = vmatprep.subr.bf16.mxu0 %v1098_v30  ;;  %v1168_v30 = vunpack.c.l.s8.bf16 %v760_v37  ;;  %v791_v37 = vld [vmem:[#allocation3 + $0x5e0] sm:$0xff] }
 0x3bc   :  { %1767 = vmatpush1.bf16.msra.mxu1 %v1095_v20  ;;  %v761_v20 = vld [vmem:[#allocation3 + $0x4f0] sm:$0xff] }
 0x3bd   :  { %1931 = vmatpush1.bf16.msra.mxu0 %v1097_v21  ;;  %1768 = vmatprep.subr.bf16.mxu1 %v1104_v22  ;;  %v1167_v21 = vunpack.c.l.s8.bf16 %v759_v17  ;;  %v1169_v22 = vunpack.c.l.s8.bf16 %v761_v20 }
 0x3be   :  { %1932 = vmatprep.subr.bf16.mxu0 %v1106_v24  ;;  %v1178_v24 = vunpack.c.h.s8.bf16 %v762_v12 }
 0x3c0   :  { %1769 = vmatpush1.bf16.msra.mxu1 %v1103_v26  ;;  %v770_v26 = vld [vmem:[#allocation3 + $0x538] sm:$0xff] }
 0x3c1   :  { %1933 = vmatpush1.bf16.msra.mxu0 %v1105_v5  ;;  %1770 = vmatprep.subr.bf16.mxu1 %v1112_v27  ;;  %v1175_v5 = vunpack.c.h.s8.bf16 %v759_v17  ;;  %v1177_v27 = vunpack.c.h.s8.bf16 %v761_v20  ;;  %v1186_v32 = vunpack.c.l.s8.bf16 %v770_v26  ;;  %v1240_v17 = vunpack.c.h.s8.bf16 %v792_v0  ;;  %v800_v20 = vld [vmem:[#allocation3 + $0x628] sm:$0xff] }
 0x3c2   :  { %1934 = vmatprep.subr.bf16.mxu0 %v1114_v29  ;;  %v1184_v29 = vunpack.c.l.s8.bf16 %v768_v25  ;;  %v799_v25 = vld [vmem:[#allocation3 + $0x620] sm:$0xff] }
 0x3c4   :  { %1771 = vmatpush1.bf16.msra.mxu1 %v1111_v33  ;;  %v769_v33 = vld [vmem:[#allocation3 + $0x530] sm:$0xff] }
 0x3c5   :  { %1935 = vmatpush1.bf16.msra.mxu0 %v1113_v34  ;;  %1781 = vmatprep.subr.bf16.mxu1 %v1120_v35  ;;  %v1183_v34 = vunpack.c.l.s8.bf16 %v767_v31  ;;  %v1185_v35 = vunpack.c.l.s8.bf16 %v769_v33 }
 0x3c6   :  { %1945 = vmatprep.subr.bf16.mxu0 %v1122_v7  ;;  %v1194_v7 = vunpack.c.h.s8.bf16 %v770_v26 }
 0x3c7   :  { %1773 = vmatmul.mubr.bf16.vlgmr.msra.gmra.mrb[12].mxu1 %v3539_v38 }
 0x3c8   :  { %1937 = vmatmul.mubr.bf16.vlgmr.msra.gmra.mrb[16].mxu0 %v3539_v38  ;;  %1782 = vmatpush1.bf16.msra.mxu1 %v1119_v52  ;;  %v1144_v38 = vunpack.c.h.s8.bf16 %v744_v41  ;;  %v778_v52 = vld [vmem:[#allocation3 + $0x578] sm:$0xff]  ;;  %v1200_v41 = vunpack.c.l.s8.bf16 %v776_v36  ;;  %v807_v36 = vld [vmem:[#allocation3 + $0x660] sm:$0xff] }
 0x3c9   :  { %1813 = vmatprep.mubr.bf16.mxu1 %v3541_v39  ;;  %1946 = vmatpush1.bf16.msra.mxu0 %v1121_v48  ;;  %v1191_v48 = vunpack.c.h.s8.bf16 %v767_v31  ;;  %v1202_v53 = vunpack.c.l.s8.bf16 %v778_v52  ;;  %v1256_v31 = vunpack.c.h.s8.bf16 %v800_v20 }
 0x3ca   :  { %1977 = vmatprep.mubr.bf16.mxu0 %v3541_v39  ;;  %1783 = vmatprep.subr.bf16.mxu1 %v1128_v40  ;;  %v1152_v39 = vunpack.c.l.s8.bf16 %v752_v58  ;;  %v1193_v40 = vunpack.c.h.s8.bf16 %v769_v33  ;;  %v783_v58 = vld [vmem:[#allocation3 + $0x5a0] sm:$0xff] }
 0x3cb   :  { %1947 = vmatprep.subr.bf16.mxu0 %v1130_v42  ;;  %v775_v42 = vld [vmem:[#allocation3 + $0x560] sm:$0xff] }
 0x3cc   :  { %1784 = vmatpush1.bf16.msra.mxu1 %v1127_v44  ;;  %v777_v44 = vld [vmem:[#allocation3 + $0x570] sm:$0xff] }
 0x3cd   :  { %1948 = vmatpush1.bf16.msra.mxu0 %v1129_v45  ;;  %1785 = vmatprep.subr.bf16.mxu1 %v1136_v49  ;;  %v1199_v45 = vunpack.c.l.s8.bf16 %v775_v42  ;;  %v1201_v49 = vunpack.c.l.s8.bf16 %v777_v44 }
 0x3ce   :  { %1949 = vmatprep.subr.bf16.mxu0 %v1138_v51  ;;  %v1210_v51 = vunpack.c.h.s8.bf16 %v778_v52 }
 0x3d0   :  { %1786 = vmatpush1.bf16.msra.mxu1 %v1135_v55  ;;  %v786_v55 = vld [vmem:[#allocation3 + $0x5b8] sm:$0xff] }
 0x3d1   :  { %1950 = vmatpush1.bf16.msra.mxu0 %v1137_v56  ;;  %1787 = vmatprep.subr.bf16.mxu1 %v1144_v38  ;;  %v1207_v56 = vunpack.c.h.s8.bf16 %v775_v42  ;;  %v1209_v38 = vunpack.c.h.s8.bf16 %v777_v44  ;;  %v1218_v59 = vunpack.c.l.s8.bf16 %v786_v55  ;;  %v818_v44 = vld [vmem:[#allocation3 + $0x6b8] sm:$0xff] }
 0x3d2   :  { %1951 = vmatprep.subr.bf16.mxu0 %v1146_v57  ;;  %v1216_v57 = vunpack.c.l.s8.bf16 %v784_v54  ;;  %v817_v54 = vld [vmem:[#allocation3 + $0x6b0] sm:$0xff] }
 0x3d4   :  { %1788 = vmatpush1.bf16.msra.mxu1 %v1143_v60  ;;  %v785_v60 = vld [vmem:[#allocation3 + $0x5b0] sm:$0xff] }
 0x3d5   :  { %1952 = vmatpush1.bf16.msra.mxu0 %v1145_v61  ;;  %1789 = vmatprep.subr.bf16.mxu1 %v1152_v39  ;;  %v1215_v61 = vunpack.c.l.s8.bf16 %v783_v58  ;;  %v1217_v39 = vunpack.c.l.s8.bf16 %v785_v60 }
 0x3d6   :  { %1953 = vmatprep.subr.bf16.mxu0 %v1154_v28  ;;  %v1226_v28 = vunpack.c.h.s8.bf16 %v786_v55 }
 0x3d8   :  { %1790 = vmatpush1.bf16.msra.mxu1 %v1151_v1  ;;  %v794_v1 = vld [vmem:[#allocation3 + $0x5f8] sm:$0xff] }
 0x3d9   :  { %1954 = vmatpush1.bf16.msra.mxu0 %v1153_v3  ;;  %1791 = vmatprep.subr.bf16.mxu1 %v1160_v10  ;;  %v1223_v3 = vunpack.c.h.s8.bf16 %v783_v58  ;;  %v1225_v10 = vunpack.c.h.s8.bf16 %v785_v60  ;;  %v1234_v12 = vunpack.c.l.s8.bf16 %v794_v1  ;;  %v824_v58 = vld [vmem:[#allocation3 + $0x6e8] sm:$0xff] }
 0x3da   :  { %1955 = vmatprep.subr.bf16.mxu0 %v1162_v11  ;;  %v1232_v11 = vunpack.c.l.s8.bf16 %v792_v0 }
 0x3dc   :  { %1792 = vmatpush1.bf16.msra.mxu1 %v1159_v13  ;;  %v793_v13 = vld [vmem:[#allocation3 + $0x5f0] sm:$0xff] }
 0x3dd   :  { %1956 = vmatpush1.bf16.msra.mxu0 %v1161_v16  ;;  %1793 = vmatprep.subr.bf16.mxu1 %v1168_v30  ;;  %v1231_v16 = vunpack.c.l.s8.bf16 %v791_v37  ;;  %v1233_v30 = vunpack.c.l.s8.bf16 %v793_v13 }
 0x3de   :  { %1957 = vmatprep.subr.bf16.mxu0 %v1170_v19  ;;  %v1242_v19 = vunpack.c.h.s8.bf16 %v794_v1  ;;  %v825_v1 = vld [vmem:[#allocation3 + $0x6f0] sm:$0xff] }
 0x3e0   :  { %1794 = vmatpush1.bf16.msra.mxu1 %v1167_v21  ;;  %v802_v21 = vld [vmem:[#allocation3 + $0x638] sm:$0xff] }
 0x3e1   :  { %1958 = vmatpush1.bf16.msra.mxu0 %v1169_v22  ;;  %1795 = vmatprep.subr.bf16.mxu1 %v1176_v23  ;;  %v1239_v22 = vunpack.c.h.s8.bf16 %v791_v37  ;;  %v1241_v23 = vunpack.c.h.s8.bf16 %v793_v13  ;;  %v1250_v26 = vunpack.c.l.s8.bf16 %v802_v21  ;;  %v1258_v33 = vunpack.c.h.s8.bf16 %v802_v21  ;;  %v832_v21 = vld [vmem:[#allocation3 + $0x728] sm:$0xff] }
 0x3e2   :  { %1959 = vmatprep.subr.bf16.mxu0 %v1178_v24  ;;  %v1248_v24 = vunpack.c.l.s8.bf16 %v800_v20 }
 0x3e4   :  { %1796 = vmatpush1.bf16.msra.mxu1 %v1175_v5  ;;  %v801_v5 = vld [vmem:[#allocation3 + $0x630] sm:$0xff] }
 0x3e5   :  { %1960 = vmatpush1.bf16.msra.mxu0 %v1177_v27  ;;  %1797 = vmatprep.subr.bf16.mxu1 %v1184_v29  ;;  %v1247_v27 = vunpack.c.l.s8.bf16 %v799_v25  ;;  %v1249_v29 = vunpack.c.l.s8.bf16 %v801_v5 }
 0x3e6   :  { %1961 = vmatprep.subr.bf16.mxu0 %v1186_v32  ;;  %v808_v32 = vld [vmem:[#allocation3 + $0x668] sm:$0xff] }
 0x3e8   :  { %1798 = vmatpush1.bf16.msra.mxu1 %v1183_v34  ;;  %v810_v34 = vld [vmem:[#allocation3 + $0x678] sm:$0xff] }
 0x3e9   :  { %1962 = vmatpush1.bf16.msra.mxu0 %v1185_v35  ;;  %1799 = vmatprep.subr.bf16.mxu1 %v1192_v14  ;;  %v1255_v35 = vunpack.c.h.s8.bf16 %v799_v25  ;;  %v1257_v14 = vunpack.c.h.s8.bf16 %v801_v5  ;;  %v1266_v52 = vunpack.c.l.s8.bf16 %v810_v34  ;;  %v1274_v42 = vunpack.c.h.s8.bf16 %v810_v34  ;;  %v840_v34 = vld [vmem:[#allocation3 + $0x768] sm:$0xff] }
 0x3ea   :  { %1963 = vmatprep.subr.bf16.mxu0 %v1194_v7  ;;  %v1264_v7 = vunpack.c.l.s8.bf16 %v808_v32  ;;  %v1312_v25 = vunpack.c.l.s8.bf16 %v832_v21 }
 0x3ec   :  { %1800 = vmatpush1.bf16.msra.mxu1 %v1191_v48  ;;  %v809_v48 = vld [vmem:[#allocation3 + $0x670] sm:$0xff] }
 0x3ed   :  { %1964 = vmatpush1.bf16.msra.mxu0 %v1193_v40  ;;  %1801 = vmatprep.subr.bf16.mxu1 %v1200_v41  ;;  %v1263_v40 = vunpack.c.l.s8.bf16 %v807_v36  ;;  %v1265_v41 = vunpack.c.l.s8.bf16 %v809_v48 }
 0x3ee   :  { %1965 = vmatprep.subr.bf16.mxu0 %v1202_v53  ;;  %v816_v53 = vld [vmem:[#allocation3 + $0x6a8] sm:$0xff] }
 0x3f0   :  { %1802 = vmatpush1.bf16.msra.mxu1 %v1199_v45  ;;  %v1271_v45 = vunpack.c.h.s8.bf16 %v807_v36  ;;  %v1328_v36 = vunpack.c.l.s8.bf16 %v840_v34 }
 0x3f1   :  { %1966 = vmatpush1.bf16.msra.mxu0 %v1201_v49  ;;  %1803 = vmatprep.subr.bf16.mxu1 %v1208_v50  ;;  %v1273_v49 = vunpack.c.h.s8.bf16 %v809_v48  ;;  %v815_v50 = vld [vmem:[#allocation3 + $0x6a0] sm:$0xff] }
 0x3f2   :  { %1967 = vmatprep.subr.bf16.mxu0 %v1210_v51  ;;  %v1282_v51 = vunpack.c.l.s8.bf16 %v818_v44  ;;  %v1279_v55 = vunpack.c.l.s8.bf16 %v815_v50  ;;  %v1287_v60 = vunpack.c.h.s8.bf16 %v815_v50 }
 0x3f4   :  { %1804 = vmatpush1.bf16.msra.mxu1 %v1207_v56  ;;  %v1281_v56 = vunpack.c.l.s8.bf16 %v817_v54 }
 0x3f5   :  { %1968 = vmatpush1.bf16.msra.mxu0 %v1209_v38  ;;  %1805 = vmatprep.subr.bf16.mxu1 %v1216_v57  ;;  %v1288_v38 = vunpack.c.h.s8.bf16 %v816_v53  ;;  %v1290_v57 = vunpack.c.h.s8.bf16 %v818_v44  ;;  %v848_v44 = vld [vmem:[#allocation3 + $0x7a8] sm:$0xff] }
 0x3f6   :  { %1969 = vmatprep.subr.bf16.mxu0 %v1218_v59  ;;  %v826_v59 = vld [vmem:[#allocation3 + $0x6f8] sm:$0xff]  ;;  %v1344_v50 = vunpack.c.l.s8.bf16 %v848_v44 }
 0x3f7   :  { %v1298_v0 = vunpack.c.l.s8.bf16 %v826_v59  ;;  %v1306_v20 = vunpack.c.h.s8.bf16 %v826_v59 }
 0x3f8   :  { %1806 = vmatpush1.bf16.msra.mxu1 %v1215_v61  ;;  %v1289_v61 = vunpack.c.h.s8.bf16 %v817_v54 }
 0x3f9   :  { %1970 = vmatpush1.bf16.msra.mxu0 %v1217_v39  ;;  %1807 = vmatprep.subr.bf16.mxu1 %v1224_v62  ;;  %v1296_v39 = vunpack.c.l.s8.bf16 %v824_v58  ;;  %v823_v62 = vld [vmem:[#allocation3 + $0x6e0] sm:$0xff] }
 0x3fa   :  { %1971 = vmatprep.subr.bf16.mxu0 %v1226_v28 }
 0x3fc   :  { %1808 = vmatpush1.bf16.msra.mxu1 %v1223_v3 }
 0x3fd   :  { %1972 = vmatpush1.bf16.msra.mxu0 %v1225_v10  ;;  %1809 = vmatprep.subr.bf16.mxu1 %v1232_v11 }
 0x3fe   :  { %1973 = vmatprep.subr.bf16.mxu0 %v1234_v12  ;;  %v1295_v12 = vunpack.c.l.s8.bf16 %v823_v62 }
 0x400   :  { %1810 = vmatpush1.bf16.msra.mxu1 %v1231_v16 }
 0x401   :  { %1974 = vmatpush1.bf16.msra.mxu0 %v1233_v30  ;;  %1811 = vmatprep.subr.bf16.mxu1 %v1240_v17  ;;  %v1297_v30 = vunpack.c.l.s8.bf16 %v825_v1  ;;  %v1304_v17 = vunpack.c.h.s8.bf16 %v824_v58  ;;  %v1352_v58 = vunpack.c.h.s8.bf16 %v848_v44  ;;  %v3144_v44 = vld [vmem:[%s3874_s12 + $0x60] sm:$0xff]  }
 0x402   :  { %1975 = vmatprep.subr.bf16.mxu0 %v1242_v19 }
 0x404   :  { %1812 = vmatpush1.bf16.msra.mxu1 %v1239_v22  ;;  %v834_v22 = vld [vmem:[#allocation3 + $0x738] sm:$0xff] }
 0x405   :  { %1976 = vmatpush1.bf16.msra.mxu0 %v1241_v23  ;;  %1822 = vmatprep.subr.bf16.mxu1 %v1248_v24  ;;  %v1303_v23 = vunpack.c.h.s8.bf16 %v823_v62  ;;  %v1305_v24 = vunpack.c.h.s8.bf16 %v825_v1  ;;  %v1314_v5 = vunpack.c.l.s8.bf16 %v834_v22  ;;  %v3611_v62 = vld [vmem:[%s3873_s11] sm:$0xff] }
 0x406   :  { %1986 = vmatprep.subr.bf16.mxu0 %v1250_v26  ;;  %v831_v26 = vld [vmem:[#allocation3 + $0x720] sm:$0xff] }
 0x407   :  { %1814 = vmatmul.mubr.bf16.vlgmr.msra.gmra.mrb[12].mxu1 %v3559_v43 }
 0x408   :  { %1978 = vmatmul.mubr.bf16.vlgmr.msra.gmra.mrb[16].mxu0 %v3559_v43  ;;  %1823 = vmatpush1.bf16.msra.mxu1 %v1247_v27  ;;  %v1272_v43 = vunpack.c.h.s8.bf16 %v808_v32  ;;  %v833_v27 = vld [vmem:[#allocation3 + $0x730] sm:$0xff]  ;;  %v1320_v32 = vunpack.c.h.s8.bf16 %v832_v21  ;;  %v2094_v21 = vrot.slane %v3611_v62, %v3497_v9 }
 0x409   :  { %1854 = vmatprep.mubr.bf16.mxu1 %v3561_v46  ;;  %1987 = vmatpush1.bf16.msra.mxu0 %v1249_v29  ;;  %v1311_v29 = vunpack.c.l.s8.bf16 %v831_v26 }
 0x40a   :  { %2018 = vmatprep.mubr.bf16.mxu0 %v3561_v46  ;;  %1824 = vmatprep.subr.bf16.mxu1 %v1256_v31  ;;  %v1280_v46 = vunpack.c.l.s8.bf16 %v816_v53  ;;  %v1313_v31 = vunpack.c.l.s8.bf16 %v833_v27 }
 0x40b   :  { %1988 = vmatprep.subr.bf16.mxu0 %v1258_v33  ;;  %v1322_v33 = vunpack.c.h.s8.bf16 %v834_v22 }
 0x40c   :  { %1825 = vmatpush1.bf16.msra.mxu1 %v1255_v35  ;;  %v842_v35 = vld [vmem:[#allocation3 + $0x778] sm:$0xff] }
 0x40d   :  { %1989 = vmatpush1.bf16.msra.mxu0 %v1257_v14  ;;  %1826 = vmatprep.subr.bf16.mxu1 %v1264_v7  ;;  %v1319_v14 = vunpack.c.h.s8.bf16 %v831_v26  ;;  %v1321_v7 = vunpack.c.h.s8.bf16 %v833_v27  ;;  %v1330_v48 = vunpack.c.l.s8.bf16 %v842_v35  ;;  %v1338_v53 = vunpack.c.h.s8.bf16 %v842_v35  ;;  %v3133_v35 = vld [vmem:[%s3874_s12 + $0xc8] sm:$0xff]  }
 0x40e   :  { %1990 = vmatprep.subr.bf16.mxu0 %v1266_v52  ;;  %v839_v52 = vld [vmem:[#allocation3 + $0x760] sm:$0xff] }
 0x410   :  { %1827 = vmatpush1.bf16.msra.mxu1 %v1263_v40  ;;  %v841_v40 = vld [vmem:[#allocation3 + $0x770] sm:$0xff] }
 0x411   :  { %1991 = vmatpush1.bf16.msra.mxu0 %v1265_v41  ;;  %1828 = vmatprep.subr.bf16.mxu1 %v1272_v43  ;;  %v1327_v41 = vunpack.c.l.s8.bf16 %v839_v52  ;;  %v1329_v43 = vunpack.c.l.s8.bf16 %v841_v40 }
 0x412   :  { %1992 = vmatprep.subr.bf16.mxu0 %v1274_v42  ;;  %v1336_v42 = vunpack.c.h.s8.bf16 %v840_v34 }
 0x414   :  { %1829 = vmatpush1.bf16.msra.mxu1 %v1271_v45  ;;  %v850_v45 = vld [vmem:[#allocation3 + $0x7b8] sm:$0xff] }
 0x415   :  { %1993 = vmatpush1.bf16.msra.mxu0 %v1273_v49  ;;  %1830 = vmatprep.subr.bf16.mxu1 %v1280_v46  ;;  %v1335_v49 = vunpack.c.h.s8.bf16 %v839_v52  ;;  %v1337_v46 = vunpack.c.h.s8.bf16 %v841_v40  ;;  %v1346_v54 = vunpack.c.l.s8.bf16 %v850_v45  ;;  %v1354_v59 = vunpack.c.h.s8.bf16 %v850_v45  ;;  %v3136_v52 = vld [vmem:[%s3874_s12 + $0x50] sm:$0xff]   ;;  %v3145_v45 = vld [vmem:[%s3874_s12 + $0xe0] sm:$0xff]  }
 0x416   :  { %1994 = vmatprep.subr.bf16.mxu0 %v1282_v51  ;;  %v847_v51 = vld [vmem:[#allocation3 + $0x7a0] sm:$0xff]  ;;  %v3139_v40 = vld [vmem:[%s3874_s12 + $0x90] sm:$0xff]  }
 0x417   :  { %v1351_v1 = vunpack.c.h.s8.bf16 %v847_v51 }
 0x418   :  { %1831 = vmatpush1.bf16.msra.mxu1 %v1279_v55  ;;  %v849_v55 = vld [vmem:[#allocation3 + $0x7b0] sm:$0xff] }
 0x419   :  { %1995 = vmatpush1.bf16.msra.mxu0 %v1281_v56  ;;  %1832 = vmatprep.subr.bf16.mxu1 %v1288_v38  ;;  %v3604_v56 = vld [vmem:[%s3872_s10] sm:$0xff]  ;;  %v1343_v38 = vunpack.c.l.s8.bf16 %v847_v51  ;;  %v3148_v51 = vld [vmem:[%s3874_s12 + $0x68] sm:$0xff]  }
 0x41a   :  { %v3593_v28 = vpop.f32.mrb[8].mxu1  ;;  %1996 = vmatprep.subr.bf16.mxu0 %v1290_v57  ;;  %v1345_v57 = vunpack.c.l.s8.bf16 %v849_v55 }
 0x41b   :  { %v3595_v3 = vpop.f32.mrb[12].mxu0  ;;  %v3597_v10 = vpop.f32.mrb[9].mxu1 }
 0x41c   :  { %v3599_v11 = vpop.f32.mrb[13].mxu0  ;;  %v1532_v37 = vpop.f32.mrb[10].mxu1  ;;  %1833 = vmatpush1.bf16.msra.mxu1 %v1287_v60  ;;  %v856_v60 = vld [vmem:[#allocation3 + $0x7e8] sm:$0xff] }
 0x41d   :  { %v1696_v13 = vpop.f32.mrb[14].mxu0  ;;  %1997 = vmatpush1.bf16.msra.mxu0 %v1289_v61  ;;  %v1533_v16 = vpop.f32.mrb[11].mxu1  ;;  %1834 = vmatprep.subr.bf16.mxu1 %v1296_v39  ;;  %v2036_v61 = vrot.slane %v3604_v56, %v3494_v8  ;;  %v858_v39 = vld [vmem:[#allocation3 + $0x7f8] sm:$0xff]  ;;  %v1353_v37 = vunpack.c.h.s8.bf16 %v849_v55  ;;  %v3149_v55 = vld [vmem:[%s3874_s12 + $0xe8] sm:$0xff]  }
 0x41e   :  { %v1697_v19 = vpop.f32.mrb[15].mxu0  ;;  %1998 = vmatprep.subr.bf16.mxu0 %v1298_v0  ;;  %v2044_v0 = vrot.slane %v3604_v56, %v3497_v9  ;;  %v855_v13 = vld [vmem:[#allocation3 + $0x7e0] sm:$0xff]  ;;  %v1362_v16 = vunpack.c.l.s8.bf16 %v858_v39 }
 0x41f   :  { %v2086_v19 = vrot.slane %v3611_v62, %v3494_v8  ;;  %v1359_v22 = vunpack.c.l.s8.bf16 %v855_v13  ;;  %v3129_v9 = vld [vmem:[%s3874_s12 + $0xc0] sm:$0xff]  }
 0x420   :  { %1835 = vmatpush1.bf16.msra.mxu1 %v1295_v12  ;;  %v1360_v12 = vunpack.c.l.s8.bf16 %v856_v60 }
 0x421   :  { %1999 = vmatpush1.bf16.msra.mxu0 %v1297_v30  ;;  %1836 = vmatprep.subr.bf16.mxu1 %v1304_v17  ;;  %v857_v30 = vld [vmem:[#allocation3 + $0x7f0] sm:$0xff]  ;;  %v2070_v17 = vmul.f32 %v2036_v61, %v3597_v10  ;;  %v1367_v10 = vunpack.c.h.s8.bf16 %v855_v13 }
 0x422   :  { %2000 = vmatprep.subr.bf16.mxu0 %v1306_v20  ;;  %v2072_v20 = vmul.f32 %v2044_v0, %v3599_v11  ;;  %v1369_v8 = vunpack.c.h.s8.bf16 %v857_v30  ;;  %v3128_v11 = vld [vmem:[%s3874_s12 + $0x40] sm:$0xff]  }
 0x423   :  { %v2120_v26 = vadd.f32 %v2086_v19, %v2070_v17  ;;  %v3161_v19 = vld [vmem:[%s3874_s12 + $0x1c0] sm:$0xff]  }
 0x424   :  { %1837 = vmatpush1.bf16.msra.mxu1 %v1303_v23  ;;  %v1361_v23 = vunpack.c.l.s8.bf16 %v857_v30  ;;  %v3160_v30 = vld [vmem:[%s3874_s12 + $0x140] sm:$0xff]  }
 0x425   :  { %2001 = vmatpush1.bf16.msra.mxu0 %v1305_v24  ;;  %1838 = vmatprep.subr.bf16.mxu1 %v1312_v25  ;;  %v1368_v24 = vunpack.c.h.s8.bf16 %v856_v60  ;;  %v1370_v25 = vunpack.c.h.s8.bf16 %v858_v39  ;;  %v2128_v27 = vmax.f32 %v2120_v26, 0.0  ;;  %v3152_v60 = vld [vmem:[%s3874_s12 + $0x70] sm:$0xff]   ;;  %v2090_v39 = vrot.slane %v3611_v62, %v3528_v63  ;;  %v3166_v26 = vld [vmem:[%s3874_s12 + $0x108] sm:$0xff]  }
 0x426   :  { %2002 = vmatprep.subr.bf16.mxu0 %v1314_v5  ;;  %v2122_v5 = vadd.f32 %v2094_v21, %v2072_v20  ;;  %v3162_v20 = vld [vmem:[%s3874_s12 + $0x100] sm:$0xff]  }
 0x427   :  { %v2136_v34 = vpack.c.bf16 %v2128_v27, %v2128_v27  ;;  %v3172_v27 = vld [vmem:[%s3874_s12 + $0x158] sm:$0xff]  }
 0x428   :  { %1839 = vmatpush1.bf16.msra.mxu1 %v1311_v29  ;;  %v2130_v29 = vmax.f32 %v2122_v5, 0.0  ;;  %v3167_v5 = vld [vmem:[%s3874_s12 + $0x188] sm:$0xff]  }
 0x429   :  { %2003 = vmatpush1.bf16.msra.mxu0 %v1313_v31  ;;  %1840 = vmatprep.subr.bf16.mxu1 %v1320_v32  ;;  %v3130_v31 = vld [vmem:[%s3874_s12] sm:$0xff]  }
 0x42a   :  { %2004 = vmatprep.subr.bf16.mxu0 %v1322_v33  ;;  %v3131_v32 = vld [vmem:[%s3874_s12 + $0x80] sm:$0xff]   ;;  %v3132_v33 = vld [vmem:[%s3874_s12 + $0x48] sm:$0xff]  }
 0x42c   :  { %1841 = vmatpush1.bf16.msra.mxu1 %v1319_v14  ;;  %v2138_v14 = vpack.c.bf16 %v2130_v29, %v2130_v29  ;;  %v3173_v29 = vld [vmem:[%s3874_s12 + $0x1d8] sm:$0xff]  }
 0x42d   :  { %2005 = vmatpush1.bf16.msra.mxu0 %v1321_v7  ;;  %1842 = vmatprep.subr.bf16.mxu1 %v1328_v36  ;;  %v3134_v7 = vld [vmem:[%s3874_s12 + $0x8] sm:$0xff]  }
 0x42e   :  { %2006 = vmatprep.subr.bf16.mxu0 %v1330_v48  ;;  %v3135_v36 = vld [vmem:[%s3874_s12 + $0x88] sm:$0xff]   ;;  %v3138_v48 = vld [vmem:[%s3874_s12 + $0x10] sm:$0xff]  }
 0x430   :  { %1843 = vmatpush1.bf16.msra.mxu1 %v1327_v41  ;;  %v3140_v41 = vld [vmem:[%s3874_s12 + $0x58] sm:$0xff]  }
 0x431   :  { %2007 = vmatpush1.bf16.msra.mxu0 %v1329_v43  ;;  %1844 = vmatprep.subr.bf16.mxu1 %v1336_v42  ;;  %v3141_v43 = vld [vmem:[%s3874_s12 + $0xd8] sm:$0xff]  }
 0x432   :  { %2008 = vmatprep.subr.bf16.mxu0 %v1338_v53  ;;  %v3142_v42 = vld [vmem:[%s3874_s12 + $0x18] sm:$0xff]  }
 0x433   :  { %v3143_v53 = vld [vmem:[%s3874_s12 + $0x98] sm:$0xff]  }
 0x434   :  { %1845 = vmatpush1.bf16.msra.mxu1 %v1335_v49  ;;  %v3146_v49 = vld [vmem:[%s3874_s12 + $0x20] sm:$0xff]  }
 0x435   :  { %2009 = vmatpush1.bf16.msra.mxu0 %v1337_v46  ;;  %1846 = vmatprep.subr.bf16.mxu1 %v1344_v50  ;;  %v2032_v46 = vrot.slane %v3604_v56, %v3486_v6  ;;  %v3147_v50 = vld [vmem:[%s3874_s12 + $0xa0] sm:$0xff]  }
 0x436   :  { %2010 = vmatprep.subr.bf16.mxu0 %v1346_v54  ;;  %v2040_v54 = vrot.slane %v3604_v56, %v3528_v63  ;;  %v3156_v63 = vld [vmem:[%s3874_s12 + $0x78] sm:$0xff]  }
 0x438   :  { %1847 = vmatpush1.bf16.msra.mxu1 %v1343_v38  ;;  %v3150_v38 = vld [vmem:[%s3874_s12 + $0x28] sm:$0xff]   ;;  %v2071_v61 = vmul.f32 %v2040_v54, %v3595_v3  ;;  %v3155_v3 = vld [vmem:[%s3874_s12 + $0xb0] sm:$0xff]   ;;  %v2060_v54 = vrot.slane %v3604_v56, %v3551_v15 }
 0x439   :  { %2011 = vmatpush1.bf16.msra.mxu0 %v1345_v57  ;;  %1848 = vmatprep.subr.bf16.mxu1 %v1352_v58  ;;  %v2069_v57 = vmul.f32 %v2032_v46, %v3593_v28  ;;  %v2082_v58 = vrot.slane %v3611_v62, %v3486_v6  ;;  %v3153_v6 = vld [vmem:[%s3874_s12 + $0xf0] sm:$0xff]   ;;  %v2056_v46 = vrot.slane %v3604_v56, %v3568_v18 }
 0x43a   :  { %2012 = vmatprep.subr.bf16.mxu0 %v1354_v59  ;;  %v3151_v59 = vld [vmem:[%s3874_s12 + $0xa8] sm:$0xff]   ;;  %v3154_v28 = vld [vmem:[%s3874_s12 + $0x30] sm:$0xff]  }
 0x43b   :  { %v2119_v0 = vadd.f32 %v2082_v58, %v2069_v57  ;;  %v2102_v57 = vrot.slane %v3611_v62, %v3531_v2 }
 0x43c   :  { %1849 = vmatpush1.bf16.msra.mxu1 %v1351_v1  ;;  %v2121_v1 = vadd.f32 %v2090_v39, %v2071_v61  ;;  %v2110_v61 = vrot.slane %v3611_v62, %v3551_v15 }
 0x43d   :  { %2013 = vmatpush1.bf16.msra.mxu0 %v1353_v37  ;;  %1850 = vmatprep.subr.bf16.mxu1 %v1360_v12  ;;  %v3157_v37 = vld [vmem:[%s3874_s12 + $0xf8] sm:$0xff]   ;;  %v2127_v13 = vmax.f32 %v2119_v0, 0.0 }
 0x43e   :  { %2014 = vmatprep.subr.bf16.mxu0 %v1362_v16  ;;  %v3158_v12 = vld [vmem:[%s3874_s12 + $0x38] sm:$0xff]   ;;  %v2129_v17 = vmax.f32 %v2121_v1, 0.0 }
 0x43f   :  { %v3159_v16 = vld [vmem:[%s3874_s12 + $0xb8] sm:$0xff]   ;;  %v2135_v21 = vpack.c.bf16 %v2127_v13, %v2127_v13 }
 0x440   :  { %1851 = vmatpush1.bf16.msra.mxu1 %v1359_v22  ;;  %v3163_v22 = vld [vmem:[%s3874_s12 + $0x180] sm:$0xff]  }
 0x441   :  { %2015 = vmatpush1.bf16.msra.mxu0 %v1361_v23  ;;  %1852 = vmatprep.subr.bf16.mxu1 %v1368_v24  ;;  %v3164_v23 = vld [vmem:[%s3874_s12 + $0x148] sm:$0xff]   ;;  %v2137_v24 = vpack.c.bf16 %v2129_v17, %v2129_v17 }
 0x442   :  { %2016 = vmatprep.subr.bf16.mxu0 %v1370_v25  ;;  %v3165_v25 = vld [vmem:[%s3874_s12 + $0x1c8] sm:$0xff]  }
 0x444   :  { %1853 = vmatpush1.bf16.msra.mxu1 %v1367_v10  ;;  %v3168_v10 = vld [vmem:[%s3874_s12 + $0x150] sm:$0xff]  }
 0x445   :  { %2017 = vmatpush1.bf16.msra.mxu0 %v1369_v8  ;;  %2964 = vmatprep.subr.bf16.mxu1 %v3128_v11  ;;  %v3169_v8 = vld [vmem:[%s3874_s12 + $0x1d0] sm:$0xff]  }
 0x446   :  { %2986 = vmatprep.subr.bf16.mxu0 %v3129_v9  ;;  %v3170_v11 = vld [vmem:[%s3874_s12 + $0x110] sm:$0xff]  }
 0x447   :  { %1855 = vmatmul.mubr.bf16.vlgmr.msra.gmra.mrb[12].mxu1 %v3575_v47  ;;  %v3171_v9 = vld [vmem:[%s3874_s12 + $0x190] sm:$0xff]  }
 0x448   :  { %2019 = vmatmul.mubr.bf16.vlgmr.msra.gmra.mrb[16].mxu0 %v3575_v47  ;;  %2965 = vmatpush3.bf16.msra.mxu1 %v3130_v31  ;;  %v3137_v47 = vld [vmem:[%s3874_s12 + $0xd0] sm:$0xff]   ;;  %v3174_v31 = vld [vmem:[%s3874_s12 + $0x118] sm:$0xff]  }
 0x449   :  { %2694 = vmatprep.mubr.bf16.mxu1 %v2136_v34  ;;  %2987 = vmatpush3.bf16.msra.mxu0 %v3131_v32  ;;  %v3175_v32 = vld [vmem:[%s3874_s12 + $0x198] sm:$0xff]   ;;  %v3177_v34 = vld [vmem:[%s3874_s12 + $0x1e0] sm:$0xff]  }
 0x44a   :  { %2734 = vmatprep.mubr.bf16.mxu0 %v2138_v14  ;;  %2966 = vmatprep.subr.bf16.mxu1 %v3132_v33  ;;  %v3176_v33 = vld [vmem:[%s3874_s12 + $0x160] sm:$0xff]  }
 0x44b   :  { %2988 = vmatprep.subr.bf16.mxu0 %v3133_v35  ;;  %v3178_v35 = vld [vmem:[%s3874_s12 + $0x120] sm:$0xff]  }
 0x44c   :  { %2967 = vmatpush3.bf16.msra.mxu1 %v3134_v7  ;;  %v3179_v14 = vld [vmem:[%s3874_s12 + $0x1a0] sm:$0xff]   ;;  %v3180_v7 = vld [vmem:[%s3874_s12 + $0x168] sm:$0xff]  }
 0x44d   :  { %2989 = vmatpush3.bf16.msra.mxu0 %v3135_v36  ;;  %2968 = vmatprep.subr.bf16.mxu1 %v3136_v52  ;;  %v3181_v36 = vld [vmem:[%s3874_s12 + $0x1e8] sm:$0xff]  }
 0x44e   :  { %2990 = vmatprep.subr.bf16.mxu0 %v3137_v47  ;;  %v3182_v52 = vld [vmem:[%s3874_s12 + $0x128] sm:$0xff]  }
 0x44f   :  { %v3183_v47 = vld [vmem:[%s3874_s12 + $0x1a8] sm:$0xff]  }
 0x450   :  { %2969 = vmatpush3.bf16.msra.mxu1 %v3138_v48  ;;  %v3184_v48 = vld [vmem:[%s3874_s12 + $0x170] sm:$0xff]  }
 0x451   :  { %2991 = vmatpush3.bf16.msra.mxu0 %v3139_v40  ;;  %2970 = vmatprep.subr.bf16.mxu1 %v3140_v41  ;;  %v3185_v40 = vld [vmem:[%s3874_s12 + $0x1f0] sm:$0xff]  }
 0x452   :  { %2992 = vmatprep.subr.bf16.mxu0 %v3141_v43  ;;  %v3186_v41 = vld [vmem:[%s3874_s12 + $0x130] sm:$0xff]  }
 0x453   :  { %v3187_v43 = vld [vmem:[%s3874_s12 + $0x1b0] sm:$0xff]  }
 0x454   :  { %2971 = vmatpush3.bf16.msra.mxu1 %v3142_v42  ;;  %v3188_v42 = vld [vmem:[%s3874_s12 + $0x178] sm:$0xff]  }
 0x455   :  { %2993 = vmatpush3.bf16.msra.mxu0 %v3143_v53  ;;  %2972 = vmatprep.subr.bf16.mxu1 %v3144_v44  ;;  %v3189_v53 = vld [vmem:[%s3874_s12 + $0x1f8] sm:$0xff]  }
 0x456   :  { %2994 = vmatprep.subr.bf16.mxu0 %v3145_v45  ;;  %v3190_v44 = vld [vmem:[%s3874_s12 + $0x138] sm:$0xff]  }
 0x457   :  { %v3191_v45 = vld [vmem:[%s3874_s12 + $0x1b8] sm:$0xff]  }
 0x458   :  { %2973 = vmatpush3.bf16.msra.mxu1 %v3146_v49  ;;  %v2048_v49 = vrot.slane %v3604_v56, %v3548_v4 }
 0x459   :  { %2995 = vmatpush3.bf16.msra.mxu0 %v3147_v50  ;;  %2974 = vmatprep.subr.bf16.mxu1 %v3148_v51  ;;  %v2052_v50 = vrot.slane %v3604_v56, %v3531_v2  ;;  %v2098_v51 = vrot.slane %v3611_v62, %v3548_v4 }
 0x45a   :  { %2996 = vmatprep.subr.bf16.mxu0 %v3149_v55 }
 0x45c   :  { %2975 = vmatpush3.bf16.msra.mxu1 %v3150_v38  ;;  %v2106_v38 = vrot.slane %v3611_v62, %v3568_v18 }
 0x45d   :  { %2997 = vmatpush3.bf16.msra.mxu0 %v3151_v59  ;;  %2976 = vmatprep.subr.bf16.mxu1 %v3152_v60 }
 0x45e   :  { %2998 = vmatprep.subr.bf16.mxu0 %v3153_v6 }
 0x460   :  { %2977 = vmatpush3.bf16.msra.mxu1 %v3154_v28 }
 0x461   :  { %2999 = vmatpush3.bf16.msra.mxu0 %v3155_v3  ;;  %2978 = vmatprep.subr.bf16.mxu1 %v3156_v63 }
 0x462   :  { %3000 = vmatprep.subr.bf16.mxu0 %v3157_v37 }
 0x464   :  { %2979 = vmatpush3.bf16.msra.mxu1 %v3158_v12 }
 0x465   :  { %3001 = vmatpush3.bf16.msra.mxu0 %v3159_v16  ;;  %3008 = vmatprep.subr.bf16.mxu1 %v3160_v30 }
 0x466   :  { %3030 = vmatprep.subr.bf16.mxu0 %v3161_v19 }
 0x467   :  { %2695 = vmatmul.mubr.bf16.vlgmr.msra.gmra.mrb[16].mxu1 %v2135_v21 }
 0x468   :  { %2735 = vmatmul.mubr.bf16.vlgmr.msra.gmra.mrb[20].mxu0 %v2137_v24  ;;  %3009 = vmatpush3.bf16.msra.mxu1 %v3162_v20 }
 0x469   :  { %3031 = vmatpush3.bf16.msra.mxu0 %v3163_v22  ;;  %3010 = vmatprep.subr.bf16.mxu1 %v3164_v23  ;;  %v2893_v22 = vld [vmem:[%s3875_s13] ss:$0 sm:$0xff] }
 0x46a   :  { %3032 = vmatprep.subr.bf16.mxu0 %v3165_v25 }
 0x46c   :  { %3011 = vmatpush3.bf16.msra.mxu1 %v3166_v26 }
 0x46d   :  { %3033 = vmatpush3.bf16.msra.mxu0 %v3167_v5  ;;  %3012 = vmatprep.subr.bf16.mxu1 %v3168_v10 }
 0x46e   :  { %3034 = vmatprep.subr.bf16.mxu0 %v3169_v8 }
 0x470   :  { %3013 = vmatpush3.bf16.msra.mxu1 %v3170_v11 }
 0x471   :  { %3035 = vmatpush3.bf16.msra.mxu0 %v3171_v9  ;;  %3014 = vmatprep.subr.bf16.mxu1 %v3172_v27 }
 0x472   :  { %3036 = vmatprep.subr.bf16.mxu0 %v3173_v29 }
 0x474   :  { %3015 = vmatpush3.bf16.msra.mxu1 %v3174_v31 }
 0x475   :  { %3037 = vmatpush3.bf16.msra.mxu0 %v3175_v32  ;;  %3016 = vmatprep.subr.bf16.mxu1 %v3176_v33 }
 0x476   :  { %3038 = vmatprep.subr.bf16.mxu0 %v3177_v34 }
 0x478   :  { %3017 = vmatpush3.bf16.msra.mxu1 %v3178_v35 }
 0x479   :  { %3039 = vmatpush3.bf16.msra.mxu0 %v3179_v14  ;;  %3018 = vmatprep.subr.bf16.mxu1 %v3180_v7 }
 0x47a   :  { %3040 = vmatprep.subr.bf16.mxu0 %v3181_v36 }
 0x47c   :  { %3019 = vmatpush3.bf16.msra.mxu1 %v3182_v52 }
 0x47d   :  { %3041 = vmatpush3.bf16.msra.mxu0 %v3183_v47  ;;  %3020 = vmatprep.subr.bf16.mxu1 %v3184_v48 }
 0x47e   :  { %3042 = vmatprep.subr.bf16.mxu0 %v3185_v40  ;;  %v2823_v40 = vld [vmem:[%s3864_s2] sm:$0xff] }
 0x480   :  { %3021 = vmatpush3.bf16.msra.mxu1 %v3186_v41  ;;  %v2825_v41 = vstv %s3862_s0 }
 0x481   :  { %3043 = vmatpush3.bf16.msra.mxu0 %v3187_v43  ;;  %3022 = vmatprep.subr.bf16.mxu1 %v3188_v42  ;;  %v2826_v43 = vmul.f32 %v2825_v41, %v2823_v40 }
 0x482   :  { %3044 = vmatprep.subr.bf16.mxu0 %v3189_v53 }
 0x483   :  { %v2958_v42 = vclamps-f32 %v2826_v43, 0.3 }
 0x484   :  { %3023 = vmatpush3.bf16.msra.mxu1 %v3190_v44 }
 0x485   :  { %3045 = vmatpush3.bf16.msra.mxu0 %v3191_v45 }
 0x51a   :  { %v1856_v55 = vpop.f32.mrb[12].mxu1 }
 0x51b   :  { %v2073_v58 = vmul.f32 %v2048_v49, %v1856_v55  ;;  %v2020_v59 = vpop.f32.mrb[16].mxu0  ;;  %v1858_v60 = vpop.f32.mrb[13].mxu1 }
 0x51c   :  { %v2075_v39 = vmul.f32 %v2056_v46, %v2020_v59  ;;  %v2074_v6 = vmul.f32 %v2052_v50, %v1858_v60  ;;  %v2022_v28 = vpop.f32.mrb[17].mxu0  ;;  %v1860_v4 = vpop.f32.mrb[14].mxu1 }
 0x51d   :  { %v2123_v0 = vadd.f32 %v2098_v51, %v2073_v58  ;;  %v2076_v3 = vmul.f32 %v2060_v54, %v2022_v28  ;;  %v2024_v56 = vpop.f32.mrb[18].mxu0  ;;  %v1861_v63 = vpop.f32.mrb[15].mxu1 }
 0x51e   :  { %v2125_v1 = vadd.f32 %v2106_v38, %v2075_v39  ;;  %v2124_v37 = vadd.f32 %v2102_v57, %v2074_v6  ;;  %v2025_v18 = vpop.f32.mrb[19].mxu0 }
 0x51f   :  { %v2131_v12 = vmax.f32 %v2123_v0, 0.0  ;;  %v2126_v13 = vadd.f32 %v2110_v61, %v2076_v3 }
 0x520   :  { %v2133_v2 = vmax.f32 %v2125_v1, 0.0  ;;  %v2132_v16 = vmax.f32 %v2124_v37, 0.0 }
 0x521   :  { %v2134_v30 = vmax.f32 %v2126_v13, 0.0  ;;  %v2139_v19 = vpack.c.bf16 %v2131_v12, %v2131_v12 }
 0x522   :  { %v2140_v17 = vpack.c.bf16 %v2132_v16, %v2132_v16  ;;  %v2141_v15 = vpack.c.bf16 %v2133_v2, %v2133_v2 }
 0x523   :  { %v2142_v20 = vpack.c.bf16 %v2134_v30, %v2134_v30 }
 0x524   :  { %2774 = vmatprep.mubr.bf16.mxu1 %v2140_v17 }
 0x525   :  { %2814 = vmatprep.mubr.bf16.mxu0 %v2142_v20  ;;  %2775 = vmatmul.mubr.bf16.vlgmr.msra.gmra.mrb[20].mxu1 %v2139_v19 }
 0x526   :  { %2815 = vmatmul.mubr.bf16.vlgmr.msra.gmra.mrb[24].mxu0 %v2141_v15 }
 0x53a   :  { %v2980_v62 = vpop.f32.mrb[16].mxu1 }
 0x53b   :  { %v3002_v21 = vpop.f32.mrb[20].mxu0  ;;  %v2981_v23 = vpop.f32.mrb[17].mxu1 }
 0x53c   :  { %v2982_v24 = vadd.f32 %v2981_v23, %v2980_v62  ;;  %v3003_v25 = vpop.f32.mrb[21].mxu0  ;;  %v2983_v26 = vpop.f32.mrb[18].mxu1 }
 0x53d   :  { %v3004_v5 = vadd.f32 %v3003_v25, %v3002_v21  ;;  %v3005_v10 = vpop.f32.mrb[22].mxu0  ;;  %v2984_v8 = vpop.f32.mrb[19].mxu1 }
 0x53e   :  { %v2697_v11 = vadd.f32 %v2982_v24, %v2893_v22  ;;  %v3006_v9 = vpop.f32.mrb[23].mxu0 }
 0x540   :  { %v2737_v27 = vadd.f32 %v3004_v5, %v2697_v11 }
 0x5f8   :  { %v3024_v29 = vpop.f32.mrb[20].mxu1 }
 0x5f9   :  { %v3046_v31 = vpop.f32.mrb[24].mxu0  ;;  %v3025_v32 = vpop.f32.mrb[21].mxu1 }
 0x5fa   :  { %v3026_v33 = vadd.f32 %v3025_v32, %v3024_v29  ;;  %v3047_v34 = vpop.f32.mrb[25].mxu0  ;;  %v3027_v35 = vpop.f32.mrb[22].mxu1 }
 0x5fb   :  { %v3048_v14 = vadd.f32 %v3047_v34, %v3046_v31  ;;  %v3049_v7 = vpop.f32.mrb[26].mxu0  ;;  %v3028_v36 = vpop.f32.mrb[23].mxu1 }
 0x5fc   :  { %v2777_v52 = vadd.f32 %v3026_v33, %v2737_v27  ;;  %v3050_v47 = vpop.f32.mrb[27].mxu0 }
 0x5fe   :  { %v2817_v48 = vadd.f32 %v3048_v14, %v2777_v52 }
 0x600   :  { %3196 = vtanh.f32 %v2817_v48 }
 0x60a   :  { %v3197_v53 = vpop.eup %3196 }
 0x60b   :  { %v2829_v44 = vadd.f32 %v3197_v53, %v2958_v42 }
 0x60d   :  { %v2959_v45 = vclamps-f32 %v2829_v44, 0.999999 }
 0x60f   :  { %2833 = vst.msk [vmem:[#allocation6] sm:$0xff] %vm2832_vm4, %v2959_v45 }
 0x610   :  { %3232 = shalt.err (!%p3229_p12)
}
 0x611   :  { %s3233_s0 = scalar_lea.hbm %s3876_s14, 128 }
 0x612   :  { %p3234_p13 = scmp.ne.s32.totalorder %s3876_s14, %s3233_s0  ;;  %p3237_p0 = scmp.lt.u32.totalorder %s3233_s0, %s3876_s14 }
 0x614   :  { %p3239_p1 = pnand %p3237_p0, %p3234_p13 }
 0x616   :  { %3242 = shalt.err (!%p3239_p1)
}
 0x617   :  { %2843 = dma.vmem_to_hbm [thread:$0]  %s2841_s22, 128, %s3876_s14, [#allocation5]  }
 0x618   :  { %3245 = dma.done.wait [#allocation5], 128  }
 0x619   :  { %3246 = vsyncadd [#allocation5], 4294967168 }
 0x61a   :  { %2847 = vsyncpa [#allocation4], 1 }
 0x61b   :  { %2848 = vsyncpa [#allocation5], 1 }

</bundles_post_ra>
